<compile_context>
chip_gen: v7x
topology: tpu7x:2x2x1
jax: 0.10.0
libtpu: 0.0.40
codegen_flags: <defaults>
</compile_context>

<pallas_src>
import jax
import jax.numpy as jnp
from jax.experimental import pallas as pl
from jax.experimental.pallas import tpu as pltpu


def _round_up(x, m):
    return ((x + m - 1) // m) * m


# ---------------------------------------------------------------------------
# Kernel
# ---------------------------------------------------------------------------
def _fused_attr_kernel(x_ref, w1t_ref, wat_ref, b_ref, o_ref):
    # x_ref  : (tile_b * N, C)   channels-last rows, N = t*h*w rows per sample
    # w1t_ref: (C, C)            conv1 weight, pre-transposed (c_in, c_out)
    # wat_ref: (C, A_pad)        concat of all head weights, transposed+padded
    # b_ref  : (1, A_pad)        concat of all head biases, padded
    # o_ref  : (tile_b, A_pad)
    tile_b = o_ref.shape[0]
    n = x_ref.shape[0] // tile_b
    c = x_ref.shape[1]

    # 1x1 conv (no bias) over every (frame, pixel) row, then ReLU.
    y = jnp.dot(x_ref[...], w1t_ref[...], preferred_element_type=jnp.float32)
    y = jnp.maximum(y, 0.0)

    # Global average pool over spatial AND temporal positions:
    # mean over h,w then mean over t == one mean over the t*h*w rows.
    feat = jnp.sum(y.reshape(tile_b, n, c), axis=1) * (1.0 / n)  # (tile_b, C)

    # All attribute heads fused into one lane-dense matmul + bias.
    logits = jnp.dot(feat, wat_ref[...], preferred_element_type=jnp.float32)
    o_ref[...] = (logits + b_ref[...]).astype(o_ref.dtype)


# ---------------------------------------------------------------------------
# One-time parameter repack (do at init, NOT per forward call)
# ---------------------------------------------------------------------------
def prepare_params(conv_weight, head_weights, head_biases):
    """conv_weight: (C, C, 1, 1); head_weights[i]: (attr_len_i, C);
    head_biases[i]: (attr_len_i,). Returns kernel-ready arrays."""
    c = conv_weight.shape[0]
    w1t = jnp.asarray(conv_weight).reshape(c, c).T          # (c_in, c_out)

    w_all = jnp.concatenate(head_weights, axis=0)            # (A, C)
    b_all = jnp.concatenate(head_biases, axis=0)              # (A,)
    attr_lens = tuple(int(w.shape[0]) for w in head_weights)
    a_total = int(w_all.shape[0])
    a_pad = max(128, _round_up(a_total, 128))                 # lane-dense out

    wat = jnp.zeros((c, a_pad), w_all.dtype).at[:, :a_total].set(w_all.T)
    bat = jnp.zeros((1, a_pad), b_all.dtype).at[0, :a_total].set(b_all)
    return dict(w1t=w1t, wat=wat, bat=bat,
                attr_lens=attr_lens, a_total=a_total, a_pad=a_pad)


# ---------------------------------------------------------------------------
# Tile selection: amortize per-step overhead without blowing VMEM (v7x-safe)
# ---------------------------------------------------------------------------
_VMEM_BUDGET_BYTES = 12 * 1024 * 1024  # fits scoped defaults on v5e/v6e/v7x


def _pick_tile_b(batch, n, c, a_pad):
    # double-buffered x block + relu intermediate + double-buffered output
    bytes_per_batch_row = 4 * (3 * n * c + 2 * a_pad)
    cap = max(8, (_VMEM_BUDGET_BYTES // bytes_per_batch_row) // 8 * 8)
    cap = min(cap, 512)
    b8 = _round_up(batch, 8)
    tile_b = min(cap, b8)
    # Give v7x's two TensorCores at least 2 parallel grid steps when possible.
    if b8 // tile_b < 2 and b8 >= 16:
        tile_b = max(8, _round_up(pl.cdiv(b8, 2), 8))
    return tile_b


# ---------------------------------------------------------------------------
# Forward wrapper
# ---------------------------------------------------------------------------
def multi_label_attribute_forward(x, params):
    """x: (b, t, C, h, w) float32.  Returns list of (b, attr_len_i) logits."""
    b, t, c, h, w = x.shape
    n = t * h * w
    a_pad = params["a_pad"]

    # Channels-last so the 1x1 conv is a plain last-dim-contraction matmul.
    x_cl = jnp.transpose(x, (0, 1, 3, 4, 2)).reshape(b, n, c)

    tile_b = _pick_tile_b(b, n, c, a_pad)
    b_pad = _round_up(max(b, tile_b), tile_b)
    if b_pad != b:
        x_cl = jnp.pad(x_cl, ((0, b_pad - b), (0, 0), (0, 0)))
    x_flat = x_cl.reshape(b_pad * n, c)

    grid = (b_pad // tile_b,)
    out = pl.pallas_call(
        _fused_attr_kernel,
        out_shape=jax.ShapeDtypeStruct((b_pad, a_pad), x.dtype),
        grid_spec=pltpu.PrefetchScalarGridSpec(
            num_scalar_prefetch=0,
            grid=grid,
            in_specs=[
                pl.BlockSpec((tile_b * n, c), lambda i: (i, 0)),
                pl.BlockSpec((c, c), lambda i: (0, 0)),
                pl.BlockSpec((c, a_pad), lambda i: (0, 0)),
                pl.BlockSpec((1, a_pad), lambda i: (0, 0)),
            ],
            out_specs=pl.BlockSpec((tile_b, a_pad), lambda i: (i, 0)),
        ),
        compiler_params=pltpu.CompilerParams(
            dimension_semantics=("parallel",),
            vmem_limit_bytes=32 * 1024 * 1024,
        ),
    )(x_flat, params["w1t"], params["wat"], params["bat"])

    out = out[:b]
    heads, off = [], 0
    for l in params["attr_lens"]:
        heads.append(out[:, off:off + l])
        off += l
    return heads


# ---------------------------------------------------------------------------
# Self-test
# ---------------------------------------------------------------------------
if __name__ == "__main__":
    # Small shapes consistent with the module: (b, t, C, h, w).
    b, t, c, h, w = 2, 4, 32, 8, 8
    attr_lens = (4, 6, 5)

    key = jax.random.PRNGKey(0)
    keys = jax.random.split(key, 2 + 2 * len(attr_lens))
    kx, kc = keys[0], keys[1]
    khw = keys[2:]

    x = jax.random.normal(kx, (b, t, c, h, w), dtype=jnp.float32)
    conv_w = (jax.random.normal(kc, (c, c, 1, 1), dtype=jnp.float32)
              * (1.0 / jnp.sqrt(c)))

    bound = 1.0 / jnp.sqrt(c)
    head_ws, head_bs = [], []
    for i, l in enumerate(attr_lens):
        head_ws.append(jax.random.uniform(
            khw[2 * i], (l, c), minval=-bound, maxval=bound,
            dtype=jnp.float32))
        head_bs.append(jax.random.uniform(
            khw[2 * i + 1], (l,), minval=-bound, maxval=bound,
            dtype=jnp.float32))

    params = prepare_params(conv_w, head_ws, head_bs)
    outs = multi_label_attribute_forward(x, params)
    outs = jax.block_until_ready(outs)

    # Pure-JAX reference of the PyTorch forward.
    w1 = conv_w.reshape(c, c)
    xf = x.reshape(b * t, c, h * w)
    conv = jnp.einsum("oc,bcs->bos", w1, xf)        # 1x1 conv, no bias
    relu = jnp.maximum(conv, 0.0)
    pooled = relu.mean(axis=-1)                     # global avg pool
    feat = pooled.reshape(b, t, c).mean(axis=1)     # temporal mean

    for y, wi, bi, l in zip(outs, head_ws, head_bs, attr_lens):
        y_ref = feat @ wi.T + bi
        assert y.shape == (b, l)
        assert jnp.allclose(y, y_ref, atol=1e-4, rtol=1e-4)

    print("KERNEL_OK")
</pallas_src>

<mosaic_0001>
module attributes {stable_mosaic.version = 11 : i64} {
  func.func @_fused_attr_kernel(%arg0: i32, %arg1: memref<2048x32xf32, #tpu.memory_space<vmem>>, %arg2: memref<32x32xf32, #tpu.memory_space<vmem>>, %arg3: memref<32x128xf32, #tpu.memory_space<vmem>>, %arg4: memref<1x128xf32, #tpu.memory_space<vmem>>, %arg5: memref<8x128xf32, #tpu.memory_space<vmem>>) attributes {dimension_semantics = [#tpu.dimension_semantics<parallel>], iteration_bounds = array<i64: 1>, scalar_prefetch = 0 : i64, scratch_operands = 0 : i64, tpu.core_type = #tpu.core_type<tc>, window_params = [{transform_indices = @transform_0, window_bounds = array<i64: 2048, 32>}, {pipeline_mode = #tpu.pipeline_mode<synchronous>, transform_indices = @transform_1, window_bounds = array<i64: 32, 32>}, {pipeline_mode = #tpu.pipeline_mode<synchronous>, transform_indices = @transform_2, window_bounds = array<i64: 32, 128>}, {pipeline_mode = #tpu.pipeline_mode<synchronous>, transform_indices = @transform_3, window_bounds = array<i64: 1, 128>}, {transform_indices = @transform_4, window_bounds = array<i64: 8, 128>}]} {
    %c0 = arith.constant 0 : index
    %c0_0 = arith.constant 0 : index
    %0 = vector.load %arg1[%c0, %c0_0] : memref<2048x32xf32, #tpu.memory_space<vmem>>, vector<2048x32xf32>
    %c0_1 = arith.constant 0 : index
    %c0_2 = arith.constant 0 : index
    %1 = vector.load %arg2[%c0_1, %c0_2] : memref<32x32xf32, #tpu.memory_space<vmem>>, vector<32x32xf32>
    %cst = arith.constant dense<0.000000e+00> : vector<2048x32xf32>
    %2 = tpu.matmul %0, %1, %cst {dimension_numbers = #tpu.dot_dimension_numbers<[1], [0], [0], [1], [0, 0, 1, 1], [], []>} : vector<2048x32xf32>, vector<32x32xf32>, vector<2048x32xf32> -> vector<2048x32xf32>
    %cst_3 = arith.constant 0.000000e+00 : f32
    %3 = vector.broadcast %cst_3 : f32 to vector<2048x32xf32>
    %4 = arith.maximumf %2, %3 : vector<2048x32xf32>
    %5 = vector.shape_cast %4 : vector<2048x32xf32> to vector<8x256x32xf32>
    %cst_4 = arith.constant dense<0.000000e+00> : vector<8x32xf32>
    %6 = vector.multi_reduction <add>, %5, %cst_4 [1] : vector<8x256x32xf32> to vector<8x32xf32>
    %cst_5 = arith.constant 3.906250e-03 : f32
    %7 = vector.broadcast %cst_5 : f32 to vector<8x32xf32>
    %8 = arith.mulf %6, %7 : vector<8x32xf32>
    %c0_6 = arith.constant 0 : index
    %c0_7 = arith.constant 0 : index
    %9 = vector.load %arg3[%c0_6, %c0_7] : memref<32x128xf32, #tpu.memory_space<vmem>>, vector<32x128xf32>
    %cst_8 = arith.constant dense<0.000000e+00> : vector<8x128xf32>
    %10 = tpu.matmul %8, %9, %cst_8 {dimension_numbers = #tpu.dot_dimension_numbers<[1], [0], [0], [1], [0, 0, 1, 1], [], []>} : vector<8x32xf32>, vector<32x128xf32>, vector<8x128xf32> -> vector<8x128xf32>
    %c0_9 = arith.constant 0 : index
    %c0_10 = arith.constant 0 : index
    %11 = vector.load %arg4[%c0_9, %c0_10] : memref<1x128xf32, #tpu.memory_space<vmem>>, vector<1x128xf32>
    %12 = vector.broadcast %11 : vector<1x128xf32> to vector<8x128xf32>
    %13 = arith.addf %10, %12 : vector<8x128xf32>
    %c0_11 = arith.constant 0 : index
    %c0_12 = arith.constant 0 : index
    %14 = vector.load %arg5[%c0_11, %c0_12] : memref<8x128xf32, #tpu.memory_space<vmem>>, vector<8x128xf32>
    tpu.vector_store %arg5[%c0_11, %c0_12], %13 {strides = array<i32>} : memref<8x128xf32, #tpu.memory_space<vmem>>, vector<8x128xf32>,
    return
  }
  func.func @transform_0(%arg0: i32) -> (i32, i32) {
    %c0_i32 = arith.constant 0 : i32
    %c0_i32_0 = arith.constant 0 : i32
    return %arg0, %c0_i32 : i32, i32
  }
  func.func @transform_1(%arg0: i32) -> (i32, i32) {
    %c0_i32 = arith.constant 0 : i32
    %c0_i32_0 = arith.constant 0 : i32
    %c0_i32_1 = arith.constant 0 : i32
    return %c0_i32, %c0_i32_0 : i32, i32
  }
  func.func @transform_2(%arg0: i32) -> (i32, i32) {
    %c0_i32 = arith.constant 0 : i32
    %c0_i32_0 = arith.constant 0 : i32
    %c0_i32_1 = arith.constant 0 : i32
    return %c0_i32, %c0_i32_0 : i32, i32
  }
  func.func @transform_3(%arg0: i32) -> (i32, i32) {
    %c0_i32 = arith.constant 0 : i32
    %c0_i32_0 = arith.constant 0 : i32
    %c0_i32_1 = arith.constant 0 : i32
    return %c0_i32, %c0_i32_0 : i32, i32
  }
  func.func @transform_4(%arg0: i32) -> (i32, i32) {
    %c0_i32 = arith.constant 0 : i32
    %c0_i32_0 = arith.constant 0 : i32
    return %arg0, %c0_i32 : i32, i32
  }
}

</mosaic_0001>

<bundles_post_ra>
// kernel: tpu_custom_call.1
= control target key start
LH: loop header
LB: loop body
LE: loop exit
PB: predicated region body
PF: predicated region fallthrough
CT: control target
= control target key end

     0   :  { %vm278_vm0 = vcmask 261120   ;;  %s5764_s0 = inlined_call_operand.vmem [shape: f32[2048,32], index: 0, kind: input, shape index: {}]   ;;  %s5765_s1 = inlined_call_operand.vmem [shape: f32[32,32], index: 1, kind: input, shape index: {}]   ;;  %s5766_s2 = inlined_call_operand.vmem [shape: f32[32,128], index: 2, kind: input, shape index: {}]   ;;  %s5767_s3 = inlined_call_operand.vmem [shape: f32[1,128], index: 3, kind: input, shape index: {}]   ;;  %s5768_s4 = inlined_call_operand.hbm [shape: f32[8,128], index: 4, kind: output, shape index: {}]  }
   0x1   :  { %v274_v0 = vld [vmem:[%s5765_s1] sm:$0xff]  ;;  %v275_v1 = vld [vmem:[%s5765_s1 + $0x8] sm:$0xff]  ;;  %v276_v2 = vld [vmem:[%s5765_s1 + $0x10] sm:$0xff] }
   0x2   :  { %v4254_v3 = vpack.c.bf16 %v275_v1, %v274_v0  ;;  %v277_v4 = vld [vmem:[%s5765_s1 + $0x18] sm:$0xff]  ;;  %v18_v5 = vld [vmem:[%s5764_s0] sm:$0xff]  ;;  %v19_v7 = vld [vmem:[%s5764_s0 + $0x8] sm:$0xff] }
   0x3   :  { %v4258_v6 = vpack.c.bf16 %v277_v4, %v276_v2  ;;  %3859 = vmatprep.mubr.msk.f32.mxu0 %vm278_vm0, %v18_v5  ;;  %v20_v8 = vld [vmem:[%s5764_s0 + $0x10] sm:$0xff]  ;;  %v21_v10 = vld [vmem:[%s5764_s0 + $0x18] sm:$0xff]  ;;  %v22_v12 = vld [vmem:[%s5764_s0 + $0x20] sm:$0xff] }
   0x4   :  { %4255 = vmatprep.subr.bf16.mxu0 %v4254_v3  ;;  %4268 = vmatprep.subr.bf16.mxu1 %v4254_v3  ;;  %v148_v9 = vld [vmem:[%s5764_s0 + $0x410] sm:$0xff]  ;;  %v149_v11 = vld [vmem:[%s5764_s0 + $0x418] sm:$0xff]  ;;  %v150_v13 = vld [vmem:[%s5764_s0 + $0x420] sm:$0xff] }
   0x5   :  { %4257 = vmatpush3.bf16.msra.mxu0 %v4254_v3  ;;  %4270 = vmatpush3.bf16.msra.mxu1 %v4254_v3  ;;  %v151_v14 = vld [vmem:[%s5764_s0 + $0x428] sm:$0xff]  ;;  %v152_v15 = vld [vmem:[%s5764_s0 + $0x430] sm:$0xff]  ;;  %v153_v18 = vld [vmem:[%s5764_s0 + $0x438] sm:$0xff] }
   0x6   :  { %4259 = vmatprep.subr.bf16.mxu0 %v4258_v6  ;;  %4269 = vmatprep.subr.bf16.mxu1 %v4258_v6  ;;  %v23_v16 = vld [vmem:[%s5764_s0 + $0x28] sm:$0xff]  ;;  %v24_v17 = vld [vmem:[%s5764_s0 + $0x30] sm:$0xff]  ;;  %v154_v19 = vld [vmem:[%s5764_s0 + $0x440] sm:$0xff] }
   0x7   :  { %4054 = vmatprep.mubr.msk.f32.mxu1 %vm278_vm0, %v148_v9  ;;  %v25_v20 = vld [vmem:[%s5764_s0 + $0x38] sm:$0xff]  ;;  %v26_v21 = vld [vmem:[%s5764_s0 + $0x40] sm:$0xff]  ;;  %v155_v22 = vld [vmem:[%s5764_s0 + $0x448] sm:$0xff] }
   0x8   :  { %v156_v23 = vld [vmem:[%s5764_s0 + $0x450] sm:$0xff]  ;;  %v27_v24 = vld [vmem:[%s5764_s0 + $0x48] sm:$0xff]  ;;  %v157_v26 = vld [vmem:[%s5764_s0 + $0x458] sm:$0xff] }
   0x9   :  { %4261 = vmatpush3.bf16.msra.mxu0 %v4258_v6  ;;  %4271 = vmatpush3.bf16.msra.mxu1 %v4258_v6  ;;  %v28_v25 = vld [vmem:[%s5764_s0 + $0x50] sm:$0xff]  ;;  %v158_v27 = vld [vmem:[%s5764_s0 + $0x460] sm:$0xff]  ;;  %v29_v28 = vld [vmem:[%s5764_s0 + $0x58] sm:$0xff] }
   0xa   :  { %v30_v29 = vld [vmem:[%s5764_s0 + $0x60] sm:$0xff]  ;;  %v159_v30 = vld [vmem:[%s5764_s0 + $0x468] sm:$0xff]  ;;  %v160_v31 = vld [vmem:[%s5764_s0 + $0x470] sm:$0xff] }
   0xb   :  { %v31_v32 = vld [vmem:[%s5764_s0 + $0x68] sm:$0xff]  ;;  %v32_v33 = vld [vmem:[%s5764_s0 + $0x70] sm:$0xff]  ;;  %v161_v34 = vld [vmem:[%s5764_s0 + $0x478] sm:$0xff] }
   0xc   :  { %3860 = vmatmul.mubr.msk.f32.vlgmr.msra.gmra.mrb[0].mxu0 %vm278_vm0, %v19_v7  ;;  %4055 = vmatmul.mubr.msk.f32.vlgmr.msra.gmra.mrb[0].mxu1 %vm278_vm0, %v149_v11  ;;  %v162_v35 = vld [vmem:[%s5764_s0 + $0x480] sm:$0xff]  ;;  %v33_v36 = vld [vmem:[%s5764_s0 + $0x78] sm:$0xff]  ;;  %v163_v38 = vld [vmem:[%s5764_s0 + $0x488] sm:$0xff] }
   0xd   :  { %3862 = vmatprep.mubr.msk.f32.mxu0 %vm278_vm0, %v20_v8  ;;  %4057 = vmatprep.mubr.msk.f32.mxu1 %vm278_vm0, %v150_v13  ;;  %v34_v37 = vld [vmem:[%s5764_s0 + $0x80] sm:$0xff]  ;;  %v164_v39 = vld [vmem:[%s5764_s0 + $0x490] sm:$0xff]  ;;  %v35_v40 = vld [vmem:[%s5764_s0 + $0x88] sm:$0xff] }
   0xe   :  { %v36_v41 = vld [vmem:[%s5764_s0 + $0x90] sm:$0xff]  ;;  %v165_v42 = vld [vmem:[%s5764_s0 + $0x498] sm:$0xff]  ;;  %v166_v43 = vld [vmem:[%s5764_s0 + $0x4a0] sm:$0xff] }
   0xf   :  { %v37_v44 = vld [vmem:[%s5764_s0 + $0x98] sm:$0xff]  ;;  %v38_v45 = vld [vmem:[%s5764_s0 + $0xa0] sm:$0xff]  ;;  %v167_v46 = vld [vmem:[%s5764_s0 + $0x4a8] sm:$0xff] }
  0x10   :  { %3863 = vmatmul.mubr.msk.f32.gmra.mrb[2].mxu0 %vm278_vm0, %v21_v10  ;;  %4058 = vmatmul.mubr.msk.f32.gmra.mrb[2].mxu1 %vm278_vm0, %v151_v14  ;;  %v168_v47 = vld [vmem:[%s5764_s0 + $0x4b0] sm:$0xff] }
  0x11   :  { %3865 = vmatprep.mubr.msk.f32.mxu0 %vm278_vm0, %v22_v12  ;;  %4060 = vmatprep.mubr.msk.f32.mxu1 %vm278_vm0, %v152_v15 }
  0x14   :  { %3866 = vmatmul.mubr.msk.f32.gmra.mrb[4].mxu0 %vm278_vm0, %v23_v16  ;;  %4061 = vmatmul.mubr.msk.f32.gmra.mrb[4].mxu1 %vm278_vm0, %v153_v18 }
  0x15   :  { %3868 = vmatprep.mubr.msk.f32.mxu0 %vm278_vm0, %v24_v17  ;;  %4063 = vmatprep.mubr.msk.f32.mxu1 %vm278_vm0, %v154_v19 }
  0x18   :  { %3869 = vmatmul.mubr.msk.f32.gmra.mrb[6].mxu0 %vm278_vm0, %v25_v20  ;;  %4064 = vmatmul.mubr.msk.f32.gmra.mrb[6].mxu1 %vm278_vm0, %v155_v22 }
  0x19   :  { %3871 = vmatprep.mubr.msk.f32.mxu0 %vm278_vm0, %v26_v21  ;;  %4066 = vmatprep.mubr.msk.f32.mxu1 %vm278_vm0, %v156_v23 }
  0x1c   :  { %3872 = vmatmul.mubr.msk.f32.gmra.mrb[8].mxu0 %vm278_vm0, %v27_v24  ;;  %4067 = vmatmul.mubr.msk.f32.gmra.mrb[8].mxu1 %vm278_vm0, %v157_v26 }
  0x1d   :  { %3874 = vmatprep.mubr.msk.f32.mxu0 %vm278_vm0, %v28_v25  ;;  %4069 = vmatprep.mubr.msk.f32.mxu1 %vm278_vm0, %v158_v27 }
  0x20   :  { %3875 = vmatmul.mubr.msk.f32.gmra.mrb[10].mxu0 %vm278_vm0, %v29_v28  ;;  %4070 = vmatmul.mubr.msk.f32.gmra.mrb[10].mxu1 %vm278_vm0, %v159_v30 }
  0x21   :  { %3877 = vmatprep.mubr.msk.f32.mxu0 %vm278_vm0, %v30_v29  ;;  %4072 = vmatprep.mubr.msk.f32.mxu1 %vm278_vm0, %v160_v31 }
  0x24   :  { %3878 = vmatmul.mubr.msk.f32.gmra.mrb[12].mxu0 %vm278_vm0, %v31_v32  ;;  %4073 = vmatmul.mubr.msk.f32.gmra.mrb[12].mxu1 %vm278_vm0, %v161_v34 }
  0x25   :  { %3880 = vmatprep.mubr.msk.f32.mxu0 %vm278_vm0, %v32_v33  ;;  %4075 = vmatprep.mubr.msk.f32.mxu1 %vm278_vm0, %v162_v35 }
  0x28   :  { %3881 = vmatmul.mubr.msk.f32.gmra.mrb[14].mxu0 %vm278_vm0, %v33_v36  ;;  %4076 = vmatmul.mubr.msk.f32.gmra.mrb[14].mxu1 %vm278_vm0, %v163_v38 }
  0x29   :  { %3883 = vmatprep.mubr.msk.f32.mxu0 %vm278_vm0, %v34_v37  ;;  %4078 = vmatprep.mubr.msk.f32.mxu1 %vm278_vm0, %v164_v39 }
  0x2c   :  { %3884 = vmatmul.mubr.msk.f32.gmra.mrb[16].mxu0 %vm278_vm0, %v35_v40  ;;  %4079 = vmatmul.mubr.msk.f32.gmra.mrb[16].mxu1 %vm278_vm0, %v165_v42 }
  0x2d   :  { %3886 = vmatprep.mubr.msk.f32.mxu0 %vm278_vm0, %v36_v41  ;;  %4081 = vmatprep.mubr.msk.f32.mxu1 %vm278_vm0, %v166_v43 }
  0x30   :  { %3887 = vmatmul.mubr.msk.f32.gmra.mrb[18].mxu0 %vm278_vm0, %v37_v44 }
  0x31   :  { %9 = vsyncpa [#allocation3], 0  ;;  %3889 = vmatprep.mubr.msk.f32.mxu0 %vm278_vm0, %v38_v45  ;;  %v39_v48 = vld [vmem:[%s5764_s0 + $0xa8] sm:$0xff]  ;;  %v40_v49 = vld [vmem:[%s5764_s0 + $0xb0] sm:$0xff]  ;;  %4082 = vmatmul.mubr.msk.f32.gmra.mrb[18].mxu1 %vm278_vm0, %v167_v46  ;;  %vm3227_vm1 = vcmask 1041409   ;;  %vm4301_vm2 = vmmov 0  }
  0x32   :  { %4084 = vmatprep.mubr.msk.f32.mxu1 %vm278_vm0, %v168_v47  ;;  %v169_v50 = vld [vmem:[%s5764_s0 + $0x4b8] sm:$0xff]  ;;  %v170_v51 = vld [vmem:[%s5764_s0 + $0x4c0] sm:$0xff]  ;;  %v171_v54 = vld [vmem:[%s5764_s0 + $0x4c8] sm:$0xff]  ;;  %vm3229_vm3 = vcmask 1042434   ;;  %vm3231_vm4 = vcmask 1043459   ;;  %vm3233_vm5 = vcmask 1044484  }
  0x33   :  { %v41_v52 = vld [vmem:[%s5764_s0 + $0xb8] sm:$0xff]  ;;  %v42_v53 = vld [vmem:[%s5764_s0 + $0xc0] sm:$0xff]  ;;  %v172_v55 = vld [vmem:[%s5764_s0 + $0x4d0] sm:$0xff]  ;;  %vm3235_vm6 = vcmask 1045509   ;;  %vm3237_vm7 = vcmask 1046534   ;;  %vm3239_vm8 = vcmask 1047559  }
  0x34   :  { %3890 = vmatmul.mubr.msk.f32.gmra.mrb[20].mxu0 %vm278_vm0, %v39_v48  ;;  %v43_v56 = vld [vmem:[%s5764_s0 + $0xc8] sm:$0xff]  ;;  %v44_v57 = vld [vmem:[%s5764_s0 + $0xd0] sm:$0xff]  ;;  %v173_v58 = vld [vmem:[%s5764_s0 + $0x4d8] sm:$0xff]  ;;  %s4303_s29 = smov [#allocation2]  }
  0x35   :  { %3892 = vmatprep.mubr.msk.f32.mxu0 %vm278_vm0, %v40_v49  ;;  %4085 = vmatmul.mubr.msk.f32.gmra.mrb[20].mxu1 %vm278_vm0, %v169_v50  ;;  %v174_v59 = vld [vmem:[%s5764_s0 + $0x4e0] sm:$0xff]  ;;  %v45_v60 = vld [vmem:[%s5764_s0 + $0xd8] sm:$0xff]  ;;  %v175_v62 = vld [vmem:[%s5764_s0 + $0x4e8] sm:$0xff]  ;;  %s3320_s30 = sshll.u32 %s4303_s29, 4  ;;  %s3321_s30 = int_to_ptr.vmem [resolvable:$true] %s3320_s30 }
  0x36   :  { %4087 = vmatprep.mubr.msk.f32.mxu1 %vm278_vm0, %v170_v51  ;;  %v46_v61 = vld [vmem:[%s5764_s0 + $0xe0] sm:$0xff]  ;;  %v176_v63 = vld [vmem:[%s5764_s0 + $0x4f0] sm:$0xff]  ;;  %v47_v0 = vld [vmem:[%s5764_s0 + $0xe8] sm:$0xff]  ;;  %s4276_s5 = scalar_lea.vmem %s3321_s30, 128  ;;  %p4281_p1 = scmp.lt.s32.totalorder %s3321_s30, %s3321_s30 }
  0x37   :  { %v48_v1 = vld [vmem:[%s5764_s0 + $0xf0] sm:$0xff]  ;;  %v177_v2 = vld [vmem:[%s5764_s0 + $0x4f8] sm:$0xff]  ;;  %v178_v3 = vld [vmem:[%s5764_s0 + $0x500] sm:$0xff]  ;;  %p4277_p0 = scmp.ne.s32.totalorder %s3321_s30, %s4276_s5  ;;  %p4282_p2 = scmp.lt.s32.totalorder %s4276_s5, %s4276_s5 }
  0x38   :  { %3893 = vmatmul.mubr.msk.f32.gmra.mrb[22].mxu0 %vm278_vm0, %v41_v52  ;;  %v49_v4 = vld [vmem:[%s5764_s0 + $0xf8] sm:$0xff]  ;;  %v50_v5 = vld [vmem:[%s5764_s0 + $0x100] sm:$0xff]  ;;  %v179_v6 = vld [vmem:[%s5764_s0 + $0x508] sm:$0xff] }
  0x39   :  { %3895 = vmatprep.mubr.msk.f32.mxu0 %vm278_vm0, %v42_v53  ;;  %4088 = vmatmul.mubr.msk.f32.gmra.mrb[22].mxu1 %vm278_vm0, %v171_v54  ;;  %v180_v7 = vld [vmem:[%s5764_s0 + $0x510] sm:$0xff]  ;;  %v51_v8 = vld [vmem:[%s5764_s0 + $0x108] sm:$0xff]  ;;  %v181_v10 = vld [vmem:[%s5764_s0 + $0x518] sm:$0xff]  ;;  %p4283_p3 = por %p4282_p2, %p4281_p1 }
  0x3a   :  { %4090 = vmatprep.mubr.msk.f32.mxu1 %vm278_vm0, %v172_v55  ;;  %v52_v9 = vld [vmem:[%s5764_s0 + $0x110] sm:$0xff]  ;;  %v182_v11 = vld [vmem:[%s5764_s0 + $0x520] sm:$0xff]  ;;  %v53_v12 = vld [vmem:[%s5764_s0 + $0x118] sm:$0xff] }
  0x3b   :  { %v54_v13 = vld [vmem:[%s5764_s0 + $0x120] sm:$0xff]  ;;  %v183_v14 = vld [vmem:[%s5764_s0 + $0x528] sm:$0xff]  ;;  %v184_v15 = vld [vmem:[%s5764_s0 + $0x530] sm:$0xff]  ;;  %p4284_p4 = pnand %p4283_p3, %p4277_p0 }
  0x3c   :  { %3896 = vmatmul.mubr.msk.f32.gmra.mrb[24].mxu0 %vm278_vm0, %v43_v56  ;;  %v55_v16 = vld [vmem:[%s5764_s0 + $0x128] sm:$0xff]  ;;  %v56_v17 = vld [vmem:[%s5764_s0 + $0x130] sm:$0xff]  ;;  %v185_v18 = vld [vmem:[%s5764_s0 + $0x538] sm:$0xff] }
  0x3d   :  { %3898 = vmatprep.mubr.msk.f32.mxu0 %vm278_vm0, %v44_v57  ;;  %4091 = vmatmul.mubr.msk.f32.gmra.mrb[24].mxu1 %vm278_vm0, %v173_v58  ;;  %v186_v19 = vld [vmem:[%s5764_s0 + $0x540] sm:$0xff]  ;;  %v57_v20 = vld [vmem:[%s5764_s0 + $0x138] sm:$0xff]  ;;  %v187_v22 = vld [vmem:[%s5764_s0 + $0x548] sm:$0xff] }
  0x3e   :  { %4093 = vmatprep.mubr.msk.f32.mxu1 %vm278_vm0, %v174_v59  ;;  %v58_v21 = vld [vmem:[%s5764_s0 + $0x140] sm:$0xff]  ;;  %v188_v23 = vld [vmem:[%s5764_s0 + $0x550] sm:$0xff]  ;;  %v59_v24 = vld [vmem:[%s5764_s0 + $0x148] sm:$0xff] }
  0x3f   :  { %v60_v25 = vld [vmem:[%s5764_s0 + $0x150] sm:$0xff]  ;;  %v189_v26 = vld [vmem:[%s5764_s0 + $0x558] sm:$0xff]  ;;  %v190_v27 = vld [vmem:[%s5764_s0 + $0x560] sm:$0xff] }
  0x40   :  { %3899 = vmatmul.mubr.msk.f32.gmra.mrb[26].mxu0 %vm278_vm0, %v45_v60  ;;  %v61_v28 = vld [vmem:[%s5764_s0 + $0x158] sm:$0xff]  ;;  %v62_v29 = vld [vmem:[%s5764_s0 + $0x160] sm:$0xff]  ;;  %v191_v30 = vld [vmem:[%s5764_s0 + $0x568] sm:$0xff] }
  0x41   :  { %3901 = vmatprep.mubr.msk.f32.mxu0 %vm278_vm0, %v46_v61  ;;  %4094 = vmatmul.mubr.msk.f32.gmra.mrb[26].mxu1 %vm278_vm0, %v175_v62  ;;  %v192_v31 = vld [vmem:[%s5764_s0 + $0x570] sm:$0xff]  ;;  %v63_v32 = vld [vmem:[%s5764_s0 + $0x168] sm:$0xff]  ;;  %v193_v34 = vld [vmem:[%s5764_s0 + $0x578] sm:$0xff] }
  0x42   :  { %4096 = vmatprep.mubr.msk.f32.mxu1 %vm278_vm0, %v176_v63  ;;  %v64_v33 = vld [vmem:[%s5764_s0 + $0x170] sm:$0xff]  ;;  %v194_v35 = vld [vmem:[%s5764_s0 + $0x580] sm:$0xff]  ;;  %v65_v36 = vld [vmem:[%s5764_s0 + $0x178] sm:$0xff] }
  0x43   :  { %v66_v37 = vld [vmem:[%s5764_s0 + $0x180] sm:$0xff]  ;;  %v195_v38 = vld [vmem:[%s5764_s0 + $0x588] sm:$0xff]  ;;  %v196_v39 = vld [vmem:[%s5764_s0 + $0x590] sm:$0xff] }
  0x44   :  { %3902 = vmatmul.mubr.msk.f32.gmra.mrb[28].mxu0 %vm278_vm0, %v47_v0  ;;  %v67_v40 = vld [vmem:[%s5764_s0 + $0x188] sm:$0xff]  ;;  %v68_v41 = vld [vmem:[%s5764_s0 + $0x190] sm:$0xff]  ;;  %v197_v42 = vld [vmem:[%s5764_s0 + $0x598] sm:$0xff] }
  0x45   :  { %3904 = vmatprep.mubr.msk.f32.mxu0 %vm278_vm0, %v48_v1  ;;  %4097 = vmatmul.mubr.msk.f32.gmra.mrb[28].mxu1 %vm278_vm0, %v177_v2  ;;  %v198_v43 = vld [vmem:[%s5764_s0 + $0x5a0] sm:$0xff]  ;;  %v69_v44 = vld [vmem:[%s5764_s0 + $0x198] sm:$0xff]  ;;  %v199_v46 = vld [vmem:[%s5764_s0 + $0x5a8] sm:$0xff] }
  0x46   :  { %4099 = vmatprep.mubr.msk.f32.mxu1 %vm278_vm0, %v178_v3  ;;  %v70_v45 = vld [vmem:[%s5764_s0 + $0x1a0] sm:$0xff]  ;;  %v200_v47 = vld [vmem:[%s5764_s0 + $0x5b0] sm:$0xff]  ;;  %v71_v48 = vld [vmem:[%s5764_s0 + $0x1a8] sm:$0xff] }
  0x47   :  { %v72_v49 = vld [vmem:[%s5764_s0 + $0x1b0] sm:$0xff]  ;;  %v201_v50 = vld [vmem:[%s5764_s0 + $0x5b8] sm:$0xff]  ;;  %v202_v51 = vld [vmem:[%s5764_s0 + $0x5c0] sm:$0xff] }
  0x48   :  { %3905 = vmatmul.mubr.msk.f32.gmra.mrb[30].mxu0 %vm278_vm0, %v49_v4  ;;  %v73_v52 = vld [vmem:[%s5764_s0 + $0x1b8] sm:$0xff]  ;;  %v74_v53 = vld [vmem:[%s5764_s0 + $0x1c0] sm:$0xff]  ;;  %v203_v54 = vld [vmem:[%s5764_s0 + $0x5c8] sm:$0xff] }
  0x49   :  { %3907 = vmatprep.mubr.msk.f32.mxu0 %vm278_vm0, %v50_v5  ;;  %4100 = vmatmul.mubr.msk.f32.gmra.mrb[30].mxu1 %vm278_vm0, %v179_v6  ;;  %v204_v55 = vld [vmem:[%s5764_s0 + $0x5d0] sm:$0xff]  ;;  %v75_v56 = vld [vmem:[%s5764_s0 + $0x1c8] sm:$0xff]  ;;  %v205_v58 = vld [vmem:[%s5764_s0 + $0x5d8] sm:$0xff] }
  0x4a   :  { %4102 = vmatprep.mubr.msk.f32.mxu1 %vm278_vm0, %v180_v7  ;;  %v76_v57 = vld [vmem:[%s5764_s0 + $0x1d0] sm:$0xff]  ;;  %v206_v59 = vld [vmem:[%s5764_s0 + $0x5e0] sm:$0xff]  ;;  %v77_v60 = vld [vmem:[%s5764_s0 + $0x1d8] sm:$0xff] }
  0x4b   :  { %v78_v61 = vld [vmem:[%s5764_s0 + $0x1e0] sm:$0xff]  ;;  %v207_v62 = vld [vmem:[%s5764_s0 + $0x5e8] sm:$0xff]  ;;  %v208_v63 = vld [vmem:[%s5764_s0 + $0x5f0] sm:$0xff] }
  0x4c   :  { %3908 = vmatmul.mubr.msk.f32.gmra.mrb[32].mxu0 %vm278_vm0, %v51_v8  ;;  %v79_v0 = vld [vmem:[%s5764_s0 + $0x1e8] sm:$0xff]  ;;  %v80_v1 = vld [vmem:[%s5764_s0 + $0x1f0] sm:$0xff]  ;;  %v209_v2 = vld [vmem:[%s5764_s0 + $0x5f8] sm:$0xff] }
  0x4d   :  { %3910 = vmatprep.mubr.msk.f32.mxu0 %vm278_vm0, %v52_v9  ;;  %4103 = vmatmul.mubr.msk.f32.gmra.mrb[32].mxu1 %vm278_vm0, %v181_v10  ;;  %v210_v3 = vld [vmem:[%s5764_s0 + $0x600] sm:$0xff]  ;;  %v81_v4 = vld [vmem:[%s5764_s0 + $0x1f8] sm:$0xff]  ;;  %v211_v6 = vld [vmem:[%s5764_s0 + $0x608] sm:$0xff] }
  0x4e   :  { %4105 = vmatprep.mubr.msk.f32.mxu1 %vm278_vm0, %v182_v11  ;;  %v82_v5 = vld [vmem:[%s5764_s0 + $0x200] sm:$0xff]  ;;  %v212_v7 = vld [vmem:[%s5764_s0 + $0x610] sm:$0xff]  ;;  %v83_v8 = vld [vmem:[%s5764_s0 + $0x208] sm:$0xff] }
  0x4f   :  { %v84_v9 = vld [vmem:[%s5764_s0 + $0x210] sm:$0xff]  ;;  %v213_v10 = vld [vmem:[%s5764_s0 + $0x618] sm:$0xff]  ;;  %v214_v11 = vld [vmem:[%s5764_s0 + $0x620] sm:$0xff] }
  0x50   :  { %3911 = vmatmul.mubr.msk.f32.gmra.mrb[34].mxu0 %vm278_vm0, %v53_v12  ;;  %v85_v12 = vld [vmem:[%s5764_s0 + $0x218] sm:$0xff] }
  0x51   :  { %3913 = vmatprep.mubr.msk.f32.mxu0 %vm278_vm0, %v54_v13  ;;  %4106 = vmatmul.mubr.msk.f32.gmra.mrb[34].mxu1 %vm278_vm0, %v183_v14  ;;  %v86_v13 = vld [vmem:[%s5764_s0 + $0x220] sm:$0xff]  ;;  %v215_v14 = vld [vmem:[%s5764_s0 + $0x628] sm:$0xff] }
  0x52   :  { %4108 = vmatprep.mubr.msk.f32.mxu1 %vm278_vm0, %v184_v15  ;;  %v216_v15 = vld [vmem:[%s5764_s0 + $0x630] sm:$0xff] }
  0x54   :  { %3914 = vmatmul.mubr.msk.f32.gmra.mrb[36].mxu0 %vm278_vm0, %v55_v16  ;;  %v87_v16 = vld [vmem:[%s5764_s0 + $0x228] sm:$0xff] }
  0x55   :  { %3916 = vmatprep.mubr.msk.f32.mxu0 %vm278_vm0, %v56_v17  ;;  %4109 = vmatmul.mubr.msk.f32.gmra.mrb[36].mxu1 %vm278_vm0, %v185_v18  ;;  %v88_v17 = vld [vmem:[%s5764_s0 + $0x230] sm:$0xff]  ;;  %v217_v18 = vld [vmem:[%s5764_s0 + $0x638] sm:$0xff] }
  0x56   :  { %4111 = vmatprep.mubr.msk.f32.mxu1 %vm278_vm0, %v186_v19  ;;  %v218_v19 = vld [vmem:[%s5764_s0 + $0x640] sm:$0xff] }
  0x58   :  { %3917 = vmatmul.mubr.msk.f32.gmra.mrb[38].mxu0 %vm278_vm0, %v57_v20  ;;  %v89_v20 = vld [vmem:[%s5764_s0 + $0x238] sm:$0xff] }
  0x59   :  { %3919 = vmatprep.mubr.msk.f32.mxu0 %vm278_vm0, %v58_v21  ;;  %4112 = vmatmul.mubr.msk.f32.gmra.mrb[38].mxu1 %vm278_vm0, %v187_v22  ;;  %v90_v21 = vld [vmem:[%s5764_s0 + $0x240] sm:$0xff]  ;;  %v219_v22 = vld [vmem:[%s5764_s0 + $0x648] sm:$0xff] }
  0x5a   :  { %4114 = vmatprep.mubr.msk.f32.mxu1 %vm278_vm0, %v188_v23  ;;  %v220_v23 = vld [vmem:[%s5764_s0 + $0x650] sm:$0xff] }
  0x5c   :  { %3920 = vmatmul.mubr.msk.f32.gmra.mrb[40].mxu0 %vm278_vm0, %v59_v24  ;;  %v91_v24 = vld [vmem:[%s5764_s0 + $0x248] sm:$0xff] }
  0x5d   :  { %3922 = vmatprep.mubr.msk.f32.mxu0 %vm278_vm0, %v60_v25  ;;  %4115 = vmatmul.mubr.msk.f32.gmra.mrb[40].mxu1 %vm278_vm0, %v189_v26  ;;  %v92_v25 = vld [vmem:[%s5764_s0 + $0x250] sm:$0xff]  ;;  %v221_v26 = vld [vmem:[%s5764_s0 + $0x658] sm:$0xff] }
  0x5e   :  { %4117 = vmatprep.mubr.msk.f32.mxu1 %vm278_vm0, %v190_v27  ;;  %v222_v27 = vld [vmem:[%s5764_s0 + $0x660] sm:$0xff] }
  0x60   :  { %3923 = vmatmul.mubr.msk.f32.gmra.mrb[42].mxu0 %vm278_vm0, %v61_v28  ;;  %v93_v28 = vld [vmem:[%s5764_s0 + $0x258] sm:$0xff] }
  0x61   :  { %3925 = vmatprep.mubr.msk.f32.mxu0 %vm278_vm0, %v62_v29  ;;  %4118 = vmatmul.mubr.msk.f32.gmra.mrb[42].mxu1 %vm278_vm0, %v191_v30  ;;  %v94_v29 = vld [vmem:[%s5764_s0 + $0x260] sm:$0xff]  ;;  %v223_v30 = vld [vmem:[%s5764_s0 + $0x668] sm:$0xff] }
  0x62   :  { %4120 = vmatprep.mubr.msk.f32.mxu1 %vm278_vm0, %v192_v31  ;;  %v224_v31 = vld [vmem:[%s5764_s0 + $0x670] sm:$0xff] }
  0x64   :  { %3926 = vmatmul.mubr.msk.f32.gmra.mrb[44].mxu0 %vm278_vm0, %v63_v32  ;;  %v95_v32 = vld [vmem:[%s5764_s0 + $0x268] sm:$0xff] }
  0x65   :  { %3928 = vmatprep.mubr.msk.f32.mxu0 %vm278_vm0, %v64_v33  ;;  %4121 = vmatmul.mubr.msk.f32.gmra.mrb[44].mxu1 %vm278_vm0, %v193_v34  ;;  %v96_v33 = vld [vmem:[%s5764_s0 + $0x270] sm:$0xff]  ;;  %v225_v34 = vld [vmem:[%s5764_s0 + $0x678] sm:$0xff] }
  0x66   :  { %4123 = vmatprep.mubr.msk.f32.mxu1 %vm278_vm0, %v194_v35  ;;  %v226_v35 = vld [vmem:[%s5764_s0 + $0x680] sm:$0xff] }
  0x68   :  { %3929 = vmatmul.mubr.msk.f32.gmra.mrb[46].mxu0 %vm278_vm0, %v65_v36  ;;  %v97_v36 = vld [vmem:[%s5764_s0 + $0x278] sm:$0xff] }
  0x69   :  { %3931 = vmatprep.mubr.msk.f32.mxu0 %vm278_vm0, %v66_v37  ;;  %4124 = vmatmul.mubr.msk.f32.gmra.mrb[46].mxu1 %vm278_vm0, %v195_v38  ;;  %v98_v37 = vld [vmem:[%s5764_s0 + $0x280] sm:$0xff]  ;;  %v227_v38 = vld [vmem:[%s5764_s0 + $0x688] sm:$0xff] }
  0x6a   :  { %4126 = vmatprep.mubr.msk.f32.mxu1 %vm278_vm0, %v196_v39  ;;  %v228_v39 = vld [vmem:[%s5764_s0 + $0x690] sm:$0xff] }
  0x6c   :  { %3932 = vmatmul.mubr.msk.f32.gmra.mrb[48].mxu0 %vm278_vm0, %v67_v40  ;;  %v99_v40 = vld [vmem:[%s5764_s0 + $0x288] sm:$0xff] }
  0x6d   :  { %3934 = vmatprep.mubr.msk.f32.mxu0 %vm278_vm0, %v68_v41  ;;  %4127 = vmatmul.mubr.msk.f32.gmra.mrb[48].mxu1 %vm278_vm0, %v197_v42  ;;  %v100_v41 = vld [vmem:[%s5764_s0 + $0x290] sm:$0xff]  ;;  %v229_v42 = vld [vmem:[%s5764_s0 + $0x698] sm:$0xff] }
  0x6e   :  { %4129 = vmatprep.mubr.msk.f32.mxu1 %vm278_vm0, %v198_v43  ;;  %v230_v43 = vld [vmem:[%s5764_s0 + $0x6a0] sm:$0xff] }
  0x70   :  { %3935 = vmatmul.mubr.msk.f32.gmra.mrb[50].mxu0 %vm278_vm0, %v69_v44  ;;  %v101_v44 = vld [vmem:[%s5764_s0 + $0x298] sm:$0xff] }
  0x71   :  { %3937 = vmatprep.mubr.msk.f32.mxu0 %vm278_vm0, %v70_v45  ;;  %4130 = vmatmul.mubr.msk.f32.gmra.mrb[50].mxu1 %vm278_vm0, %v199_v46  ;;  %v102_v45 = vld [vmem:[%s5764_s0 + $0x2a0] sm:$0xff]  ;;  %v231_v46 = vld [vmem:[%s5764_s0 + $0x6a8] sm:$0xff] }
  0x72   :  { %4132 = vmatprep.mubr.msk.f32.mxu1 %vm278_vm0, %v200_v47  ;;  %v232_v47 = vld [vmem:[%s5764_s0 + $0x6b0] sm:$0xff] }
  0x74   :  { %3938 = vmatmul.mubr.msk.f32.gmra.mrb[52].mxu0 %vm278_vm0, %v71_v48  ;;  %v103_v48 = vld [vmem:[%s5764_s0 + $0x2a8] sm:$0xff] }
  0x75   :  { %3940 = vmatprep.mubr.msk.f32.mxu0 %vm278_vm0, %v72_v49  ;;  %4133 = vmatmul.mubr.msk.f32.gmra.mrb[52].mxu1 %vm278_vm0, %v201_v50  ;;  %v104_v49 = vld [vmem:[%s5764_s0 + $0x2b0] sm:$0xff]  ;;  %v233_v50 = vld [vmem:[%s5764_s0 + $0x6b8] sm:$0xff] }
  0x76   :  { %4135 = vmatprep.mubr.msk.f32.mxu1 %vm278_vm0, %v202_v51  ;;  %v234_v51 = vld [vmem:[%s5764_s0 + $0x6c0] sm:$0xff] }
  0x78   :  { %3941 = vmatmul.mubr.msk.f32.gmra.mrb[54].mxu0 %vm278_vm0, %v73_v52  ;;  %v105_v52 = vld [vmem:[%s5764_s0 + $0x2b8] sm:$0xff] }
  0x79   :  { %3943 = vmatprep.mubr.msk.f32.mxu0 %vm278_vm0, %v74_v53  ;;  %4136 = vmatmul.mubr.msk.f32.gmra.mrb[54].mxu1 %vm278_vm0, %v203_v54  ;;  %v106_v53 = vld [vmem:[%s5764_s0 + $0x2c0] sm:$0xff]  ;;  %v235_v54 = vld [vmem:[%s5764_s0 + $0x6c8] sm:$0xff] }
  0x7a   :  { %4138 = vmatprep.mubr.msk.f32.mxu1 %vm278_vm0, %v204_v55  ;;  %v236_v55 = vld [vmem:[%s5764_s0 + $0x6d0] sm:$0xff] }
  0x7c   :  { %3944 = vmatmul.mubr.msk.f32.gmra.mrb[56].mxu0 %vm278_vm0, %v75_v56  ;;  %v107_v56 = vld [vmem:[%s5764_s0 + $0x2c8] sm:$0xff] }
  0x7d   :  { %3946 = vmatprep.mubr.msk.f32.mxu0 %vm278_vm0, %v76_v57  ;;  %4139 = vmatmul.mubr.msk.f32.gmra.mrb[56].mxu1 %vm278_vm0, %v205_v58  ;;  %v108_v57 = vld [vmem:[%s5764_s0 + $0x2d0] sm:$0xff]  ;;  %v237_v58 = vld [vmem:[%s5764_s0 + $0x6d8] sm:$0xff] }
  0x7e   :  { %4141 = vmatprep.mubr.msk.f32.mxu1 %vm278_vm0, %v206_v59  ;;  %v4300_v59 = vmov 0.0|0.0  }
  0x7f   :  { %4262 = vmatprep.subr.bf16.mxu1 %v4300_v59 }
  0x80   :  { %3947 = vmatmul.mubr.msk.f32.gmra.mrb[58].mxu0 %vm278_vm0, %v77_v60  ;;  %v238_v60 = vld [vmem:[%s5764_s0 + $0x6e0] sm:$0xff] }
  0x81   :  { %3949 = vmatprep.mubr.msk.f32.mxu0 %vm278_vm0, %v78_v61  ;;  %4142 = vmatmul.mubr.msk.f32.gmra.mrb[58].mxu1 %vm278_vm0, %v207_v62  ;;  %v3208_v61 = vld [vmem:[%s5766_s2] sm:$0xff]  ;;  %v3209_v62 = vld [vmem:[%s5766_s2 + $0x8] sm:$0xff] }
  0x82   :  { %4144 = vmatprep.mubr.msk.f32.mxu1 %vm278_vm0, %v208_v63  ;;  %v109_v63 = vld [vmem:[%s5764_s0 + $0x2d8] sm:$0xff] }
  0x84   :  { %3950 = vmatmul.mubr.msk.f32.gmra.mrb[60].mxu0 %vm278_vm0, %v79_v0  ;;  %v4263_v0 = vpack.c.bf16 %v3209_v62, %v3208_v61  ;;  %v260_v62 = vld [vmem:[%s5764_s0 + $0x790] sm:$0xff] }
  0x85   :  { %3952 = vmatprep.mubr.msk.f32.mxu0 %vm278_vm0, %v80_v1  ;;  %4145 = vmatmul.mubr.msk.f32.gmra.mrb[60].mxu1 %vm278_vm0, %v209_v2  ;;  %v110_v1 = vld [vmem:[%s5764_s0 + $0x2e0] sm:$0xff]  ;;  %v239_v2 = vld [vmem:[%s5764_s0 + $0x6e8] sm:$0xff] }
  0x86   :  { %4147 = vmatprep.mubr.msk.f32.mxu1 %vm278_vm0, %v210_v3  ;;  %4264 = vmatpush3.bf16.msra.mxu1 %v4263_v0  ;;  %v240_v3 = vld [vmem:[%s5764_s0 + $0x6f0] sm:$0xff] }
  0x87   :  { %4265 = vmatprep.subr.bf16.mxu1 %v4300_v59  ;;  %v259_v59 = vld [vmem:[%s5764_s0 + $0x788] sm:$0xff] }
  0x88   :  { %3953 = vmatmul.mubr.msk.f32.gmra.mrb[62].mxu0 %vm278_vm0, %v81_v4  ;;  %v111_v4 = vld [vmem:[%s5764_s0 + $0x2e8] sm:$0xff] }
  0x89   :  { %3955 = vmatprep.mubr.msk.f32.mxu0 %vm278_vm0, %v82_v5  ;;  %4148 = vmatmul.mubr.msk.f32.gmra.mrb[62].mxu1 %vm278_vm0, %v211_v6  ;;  %v112_v5 = vld [vmem:[%s5764_s0 + $0x2f0] sm:$0xff]  ;;  %v241_v6 = vld [vmem:[%s5764_s0 + $0x6f8] sm:$0xff] }
  0x8a   :  { %4150 = vmatprep.mubr.msk.f32.mxu1 %vm278_vm0, %v212_v7  ;;  %v242_v7 = vld [vmem:[%s5764_s0 + $0x700] sm:$0xff] }
  0x8c   :  { %3956 = vmatmul.mubr.msk.f32.gmra.mrb[64].mxu0 %vm278_vm0, %v83_v8  ;;  %v113_v8 = vld [vmem:[%s5764_s0 + $0x2f8] sm:$0xff] }
  0x8d   :  { %3958 = vmatprep.mubr.msk.f32.mxu0 %vm278_vm0, %v84_v9  ;;  %4151 = vmatmul.mubr.msk.f32.gmra.mrb[64].mxu1 %vm278_vm0, %v213_v10  ;;  %v114_v9 = vld [vmem:[%s5764_s0 + $0x300] sm:$0xff]  ;;  %v243_v10 = vld [vmem:[%s5764_s0 + $0x708] sm:$0xff] }
  0x8e   :  { %4153 = vmatprep.mubr.msk.f32.mxu1 %vm278_vm0, %v214_v11  ;;  %v244_v11 = vld [vmem:[%s5764_s0 + $0x710] sm:$0xff] }
  0x90   :  { %3959 = vmatmul.mubr.msk.f32.gmra.mrb[66].mxu0 %vm278_vm0, %v85_v12  ;;  %v115_v12 = vld [vmem:[%s5764_s0 + $0x308] sm:$0xff] }
  0x91   :  { %3961 = vmatprep.mubr.msk.f32.mxu0 %vm278_vm0, %v86_v13  ;;  %4154 = vmatmul.mubr.msk.f32.gmra.mrb[66].mxu1 %vm278_vm0, %v215_v14  ;;  %v116_v13 = vld [vmem:[%s5764_s0 + $0x310] sm:$0xff]  ;;  %v245_v14 = vld [vmem:[%s5764_s0 + $0x718] sm:$0xff] }
  0x92   :  { %4156 = vmatprep.mubr.msk.f32.mxu1 %vm278_vm0, %v216_v15  ;;  %v246_v15 = vld [vmem:[%s5764_s0 + $0x720] sm:$0xff] }
  0x94   :  { %3962 = vmatmul.mubr.msk.f32.gmra.mrb[68].mxu0 %vm278_vm0, %v87_v16  ;;  %v117_v16 = vld [vmem:[%s5764_s0 + $0x318] sm:$0xff] }
  0x95   :  { %3964 = vmatprep.mubr.msk.f32.mxu0 %vm278_vm0, %v88_v17  ;;  %4157 = vmatmul.mubr.msk.f32.gmra.mrb[68].mxu1 %vm278_vm0, %v217_v18  ;;  %v118_v17 = vld [vmem:[%s5764_s0 + $0x320] sm:$0xff]  ;;  %v247_v18 = vld [vmem:[%s5764_s0 + $0x728] sm:$0xff] }
  0x96   :  { %4159 = vmatprep.mubr.msk.f32.mxu1 %vm278_vm0, %v218_v19  ;;  %v248_v19 = vld [vmem:[%s5764_s0 + $0x730] sm:$0xff] }
  0x98   :  { %3965 = vmatmul.mubr.msk.f32.gmra.mrb[70].mxu0 %vm278_vm0, %v89_v20  ;;  %v119_v20 = vld [vmem:[%s5764_s0 + $0x328] sm:$0xff] }
  0x99   :  { %3967 = vmatprep.mubr.msk.f32.mxu0 %vm278_vm0, %v90_v21  ;;  %4160 = vmatmul.mubr.msk.f32.gmra.mrb[70].mxu1 %vm278_vm0, %v219_v22  ;;  %v120_v21 = vld [vmem:[%s5764_s0 + $0x330] sm:$0xff]  ;;  %v249_v22 = vld [vmem:[%s5764_s0 + $0x738] sm:$0xff] }
  0x9a   :  { %4162 = vmatprep.mubr.msk.f32.mxu1 %vm278_vm0, %v220_v23  ;;  %v250_v23 = vld [vmem:[%s5764_s0 + $0x740] sm:$0xff] }
  0x9c   :  { %3968 = vmatmul.mubr.msk.f32.gmra.mrb[72].mxu0 %vm278_vm0, %v91_v24  ;;  %v121_v24 = vld [vmem:[%s5764_s0 + $0x338] sm:$0xff] }
  0x9d   :  { %3970 = vmatprep.mubr.msk.f32.mxu0 %vm278_vm0, %v92_v25  ;;  %4163 = vmatmul.mubr.msk.f32.gmra.mrb[72].mxu1 %vm278_vm0, %v221_v26  ;;  %v122_v25 = vld [vmem:[%s5764_s0 + $0x340] sm:$0xff]  ;;  %v251_v26 = vld [vmem:[%s5764_s0 + $0x748] sm:$0xff] }
  0x9e   :  { %4165 = vmatprep.mubr.msk.f32.mxu1 %vm278_vm0, %v222_v27  ;;  %v252_v27 = vld [vmem:[%s5764_s0 + $0x750] sm:$0xff] }
  0xa0   :  { %3971 = vmatmul.mubr.msk.f32.gmra.mrb[74].mxu0 %vm278_vm0, %v93_v28  ;;  %v123_v28 = vld [vmem:[%s5764_s0 + $0x348] sm:$0xff] }
  0xa1   :  { %3973 = vmatprep.mubr.msk.f32.mxu0 %vm278_vm0, %v94_v29  ;;  %4166 = vmatmul.mubr.msk.f32.gmra.mrb[74].mxu1 %vm278_vm0, %v223_v30  ;;  %v124_v29 = vld [vmem:[%s5764_s0 + $0x350] sm:$0xff]  ;;  %v253_v30 = vld [vmem:[%s5764_s0 + $0x758] sm:$0xff] }
  0xa2   :  { %4168 = vmatprep.mubr.msk.f32.mxu1 %vm278_vm0, %v224_v31  ;;  %v254_v31 = vld [vmem:[%s5764_s0 + $0x760] sm:$0xff] }
  0xa4   :  { %3974 = vmatmul.mubr.msk.f32.gmra.mrb[76].mxu0 %vm278_vm0, %v95_v32  ;;  %v125_v32 = vld [vmem:[%s5764_s0 + $0x358] sm:$0xff] }
  0xa5   :  { %3976 = vmatprep.mubr.msk.f32.mxu0 %vm278_vm0, %v96_v33  ;;  %4169 = vmatmul.mubr.msk.f32.gmra.mrb[76].mxu1 %vm278_vm0, %v225_v34  ;;  %v126_v33 = vld [vmem:[%s5764_s0 + $0x360] sm:$0xff] }
  0xa6   :  { %4171 = vmatprep.mubr.msk.f32.mxu1 %vm278_vm0, %v226_v35  ;;  %v255_v35 = vld [vmem:[%s5764_s0 + $0x768] sm:$0xff] }
  0xa8   :  { %3977 = vmatmul.mubr.msk.f32.gmra.mrb[78].mxu0 %vm278_vm0, %v97_v36 }
  0xa9   :  { %3979 = vmatprep.mubr.msk.f32.mxu0 %vm278_vm0, %v98_v37  ;;  %4172 = vmatmul.mubr.msk.f32.gmra.mrb[78].mxu1 %vm278_vm0, %v227_v38  ;;  %v256_v38 = vld [vmem:[%s5764_s0 + $0x770] sm:$0xff] }
  0xaa   :  { %4174 = vmatprep.mubr.msk.f32.mxu1 %vm278_vm0, %v228_v39 }
  0xac   :  { %3980 = vmatmul.mubr.msk.f32.gmra.mrb[80].mxu0 %vm278_vm0, %v99_v40  ;;  %v127_v40 = vld [vmem:[%s5764_s0 + $0x368] sm:$0xff] }
  0xad   :  { %3982 = vmatprep.mubr.msk.f32.mxu0 %vm278_vm0, %v100_v41  ;;  %4175 = vmatmul.mubr.msk.f32.gmra.mrb[80].mxu1 %vm278_vm0, %v229_v42 }
  0xae   :  { %4177 = vmatprep.mubr.msk.f32.mxu1 %vm278_vm0, %v230_v43  ;;  %v128_v43 = vld [vmem:[%s5764_s0 + $0x370] sm:$0xff] }
  0xb0   :  { %3983 = vmatmul.mubr.msk.f32.gmra.mrb[82].mxu0 %vm278_vm0, %v101_v44 }
  0xb1   :  { %3985 = vmatprep.mubr.msk.f32.mxu0 %vm278_vm0, %v102_v45  ;;  %4178 = vmatmul.mubr.msk.f32.gmra.mrb[82].mxu1 %vm278_vm0, %v231_v46 }
  0xb2   :  { %4180 = vmatprep.mubr.msk.f32.mxu1 %vm278_vm0, %v232_v47  ;;  %v257_v47 = vld [vmem:[%s5764_s0 + $0x778] sm:$0xff] }
  0xb4   :  { %3986 = vmatmul.mubr.msk.f32.gmra.mrb[84].mxu0 %vm278_vm0, %v103_v48 }
  0xb5   :  { %3988 = vmatprep.mubr.msk.f32.mxu0 %vm278_vm0, %v104_v49  ;;  %4181 = vmatmul.mubr.msk.f32.gmra.mrb[84].mxu1 %vm278_vm0, %v233_v50  ;;  %v258_v50 = vld [vmem:[%s5764_s0 + $0x780] sm:$0xff] }
  0xb6   :  { %4183 = vmatprep.mubr.msk.f32.mxu1 %vm278_vm0, %v234_v51 }
  0xb8   :  { %3989 = vmatmul.mubr.msk.f32.gmra.mrb[86].mxu0 %vm278_vm0, %v105_v52 }
  0xb9   :  { %3991 = vmatprep.mubr.msk.f32.mxu0 %vm278_vm0, %v106_v53  ;;  %4184 = vmatmul.mubr.msk.f32.gmra.mrb[86].mxu1 %vm278_vm0, %v235_v54  ;;  %v129_v53 = vld [vmem:[%s5764_s0 + $0x378] sm:$0xff] }
  0xba   :  { %4186 = vmatprep.mubr.msk.f32.mxu1 %vm278_vm0, %v236_v55  ;;  %v130_v55 = vld [vmem:[%s5764_s0 + $0x380] sm:$0xff] }
  0xbc   :  { %3992 = vmatmul.mubr.msk.f32.gmra.mrb[88].mxu0 %vm278_vm0, %v107_v56 }
  0xbd   :  { %3994 = vmatprep.mubr.msk.f32.mxu0 %vm278_vm0, %v108_v57  ;;  %4187 = vmatmul.mubr.msk.f32.gmra.mrb[88].mxu1 %vm278_vm0, %v237_v58 }
  0xbe   :  { %4189 = vmatprep.mubr.msk.f32.mxu1 %vm278_vm0, %v238_v60 }
  0xc0   :  { %3995 = vmatmul.mubr.msk.f32.gmra.mrb[90].mxu0 %vm278_vm0, %v109_v63 }
  0xc1   :  { %3997 = vmatprep.mubr.msk.f32.mxu0 %vm278_vm0, %v110_v1  ;;  %4190 = vmatmul.mubr.msk.f32.gmra.mrb[90].mxu1 %vm278_vm0, %v239_v2  ;;  %v131_v2 = vld [vmem:[%s5764_s0 + $0x388] sm:$0xff] }
  0xc2   :  { %4192 = vmatprep.mubr.msk.f32.mxu1 %vm278_vm0, %v240_v3 }
  0xc4   :  { %3998 = vmatmul.mubr.msk.f32.gmra.mrb[92].mxu0 %vm278_vm0, %v111_v4 }
  0xc5   :  { %4000 = vmatprep.mubr.msk.f32.mxu0 %vm278_vm0, %v112_v5  ;;  %4193 = vmatmul.mubr.msk.f32.gmra.mrb[92].mxu1 %vm278_vm0, %v241_v6  ;;  %v132_v5 = vld [vmem:[%s5764_s0 + $0x390] sm:$0xff] }
  0xc6   :  { %4195 = vmatprep.mubr.msk.f32.mxu1 %vm278_vm0, %v242_v7 }
  0xc8   :  { %4001 = vmatmul.mubr.msk.f32.gmra.mrb[94].mxu0 %vm278_vm0, %v113_v8 }
  0xc9   :  { %4003 = vmatprep.mubr.msk.f32.mxu0 %vm278_vm0, %v114_v9  ;;  %4196 = vmatmul.mubr.msk.f32.gmra.mrb[94].mxu1 %vm278_vm0, %v243_v10  ;;  %v261_v9 = vld [vmem:[%s5764_s0 + $0x798] sm:$0xff] }
  0xca   :  { %4198 = vmatprep.mubr.msk.f32.mxu1 %vm278_vm0, %v244_v11 }
  0xcc   :  { %4004 = vmatmul.mubr.msk.f32.gmra.mrb[96].mxu0 %vm278_vm0, %v115_v12  ;;  %v262_v12 = vld [vmem:[%s5764_s0 + $0x7a0] sm:$0xff] }
  0xcd   :  { %4006 = vmatprep.mubr.msk.f32.mxu0 %vm278_vm0, %v116_v13  ;;  %4199 = vmatmul.mubr.msk.f32.gmra.mrb[96].mxu1 %vm278_vm0, %v245_v14 }
  0xce   :  { %4201 = vmatprep.mubr.msk.f32.mxu1 %vm278_vm0, %v246_v15 }
  0xd0   :  { %4007 = vmatmul.mubr.msk.f32.gmra.mrb[98].mxu0 %vm278_vm0, %v117_v16  ;;  %v133_v16 = vld [vmem:[%s5764_s0 + $0x398] sm:$0xff] }
  0xd1   :  { %4009 = vmatprep.mubr.msk.f32.mxu0 %vm278_vm0, %v118_v17  ;;  %4202 = vmatmul.mubr.msk.f32.gmra.mrb[98].mxu1 %vm278_vm0, %v247_v18 }
  0xd2   :  { %4204 = vmatprep.mubr.msk.f32.mxu1 %vm278_vm0, %v248_v19  ;;  %v134_v19 = vld [vmem:[%s5764_s0 + $0x3a0] sm:$0xff] }
  0xd4   :  { %4010 = vmatmul.mubr.msk.f32.gmra.mrb[100].mxu0 %vm278_vm0, %v119_v20 }
  0xd5   :  { %4012 = vmatprep.mubr.msk.f32.mxu0 %vm278_vm0, %v120_v21  ;;  %4205 = vmatmul.mubr.msk.f32.gmra.mrb[100].mxu1 %vm278_vm0, %v249_v22 }
  0xd6   :  { %4207 = vmatprep.mubr.msk.f32.mxu1 %vm278_vm0, %v250_v23  ;;  %v263_v23 = vld [vmem:[%s5764_s0 + $0x7a8] sm:$0xff] }
  0xd8   :  { %4013 = vmatmul.mubr.msk.f32.gmra.mrb[102].mxu0 %vm278_vm0, %v121_v24 }
  0xd9   :  { %4015 = vmatprep.mubr.msk.f32.mxu0 %vm278_vm0, %v122_v25  ;;  %4208 = vmatmul.mubr.msk.f32.gmra.mrb[102].mxu1 %vm278_vm0, %v251_v26  ;;  %v264_v26 = vld [vmem:[%s5764_s0 + $0x7b0] sm:$0xff] }
  0xda   :  { %4210 = vmatprep.mubr.msk.f32.mxu1 %vm278_vm0, %v252_v27 }
  0xdc   :  { %4016 = vmatmul.mubr.msk.f32.gmra.mrb[104].mxu0 %vm278_vm0, %v123_v28 }
  0xdd   :  { %4018 = vmatprep.mubr.msk.f32.mxu0 %vm278_vm0, %v124_v29  ;;  %4211 = vmatmul.mubr.msk.f32.gmra.mrb[104].mxu1 %vm278_vm0, %v253_v30  ;;  %v135_v30 = vld [vmem:[%s5764_s0 + $0x3a8] sm:$0xff] }
  0xde   :  { %4213 = vmatprep.mubr.msk.f32.mxu1 %vm278_vm0, %v254_v31 }
  0xdf   :  { %v3861_v34 = vpop.f32.mrb[0].mxu0  ;;  %v5220_v41 = vpop.f32.mrb[0].mxu1 }
  0xe0   :  { %v2393_v36 = vmax.f32 %v3861_v34, 0.0  ;;  %v1113_v37 = vpop.f32.mrb[1].mxu0  ;;  %4019 = vmatmul.mubr.msk.f32.gmra.mrb[106].mxu0 %vm278_vm0, %v125_v32  ;;  %v5227_v44 = vpop.f32.mrb[1].mxu1 }
  0xe1   :  { %v2392_v39 = vmax.f32 %v1113_v37, 0.0  ;;  %4021 = vmatprep.mubr.msk.f32.mxu0 %vm278_vm0, %v126_v33  ;;  %4214 = vmatmul.mubr.msk.f32.gmra.mrb[106].mxu1 %vm278_vm0, %v255_v35  ;;  %v136_v33 = vld [vmem:[%s5764_s0 + $0x3b0] sm:$0xff]  ;;  %v265_v37 = vld [vmem:[%s5764_s0 + $0x7b8] sm:$0xff] }
  0xe2   :  { %v2649_v42 = vsel %vm278_vm0, %v2393_v36, 0.0  ;;  %4216 = vmatprep.mubr.msk.f32.mxu1 %vm278_vm0, %v256_v38 }
  0xe3   :  { %v2648_v45 = vsel %vm278_vm0, %v2392_v39, 0.0  ;;  %v3864_v46 = vpop.f32.mrb[2].mxu0  ;;  %v5242_v54 = vpop.f32.mrb[2].mxu1 }
  0xe4   :  { %v2650_v48 = vadd.f32 %v2649_v42, %v2648_v45  ;;  %v1123_v49 = vpop.f32.mrb[3].mxu0  ;;  %4022 = vmatmul.mubr.msk.f32.gmra.mrb[108].mxu0 %vm278_vm0, %v127_v40  ;;  %v2395_v51 = vmax.f32 %v3864_v46, 0.0  ;;  %v5248_v56 = vpop.f32.mrb[3].mxu1  ;;  %v266_v40 = vld [vmem:[%s5764_s0 + $0x7c0] sm:$0xff]  ;;  %v137_v46 = vld [vmem:[%s5764_s0 + $0x3b8] sm:$0xff] }
  0xe5   :  { %v2394_v52 = vmax.f32 %v1123_v49, 0.0  ;;  %4024 = vmatprep.mubr.msk.f32.mxu0 %vm278_vm0, %v128_v43  ;;  %4217 = vmatmul.mubr.msk.f32.gmra.mrb[108].mxu1 %vm278_vm0, %v257_v47  ;;  %v138_v49 = vld [vmem:[%s5764_s0 + $0x3c0] sm:$0xff] }
  0xe6   :  { %4219 = vmatprep.mubr.msk.f32.mxu1 %vm278_vm0, %v258_v50  ;;  %v2653_v63 = vsel %vm278_vm0, %v2395_v51, 0.0 }
  0xe7   :  { %v2651_v57 = vsel %vm278_vm0, %v2394_v52, 0.0  ;;  %v3867_v58 = vpop.f32.mrb[4].mxu0  ;;  %v5264_v3 = vpop.f32.mrb[4].mxu1 }
  0xe8   :  { %v2652_v60 = vadd.f32 %v2651_v57, %v2650_v48  ;;  %v1133_v61 = vpop.f32.mrb[5].mxu0  ;;  %4025 = vmatmul.mubr.msk.f32.gmra.mrb[110].mxu0 %vm278_vm0, %v129_v53  ;;  %v2397_v0 = vmax.f32 %v3867_v58, 0.0  ;;  %v5270_v6 = vpop.f32.mrb[5].mxu1  ;;  %v267_v53 = vld [vmem:[%s5764_s0 + $0x7c8] sm:$0xff]  ;;  %v268_v58 = vld [vmem:[%s5764_s0 + $0x7d0] sm:$0xff] }
  0xe9   :  { %v2396_v1 = vmax.f32 %v1133_v61, 0.0  ;;  %4027 = vmatprep.mubr.msk.f32.mxu0 %vm278_vm0, %v130_v55  ;;  %4220 = vmatmul.mubr.msk.f32.gmra.mrb[110].mxu1 %vm278_vm0, %v259_v59 }
  0xea   :  { %v2654_v4 = vadd.f32 %v2653_v63, %v2652_v60  ;;  %4222 = vmatprep.mubr.msk.f32.mxu1 %vm278_vm0, %v260_v62  ;;  %v2657_v13 = vsel %vm278_vm0, %v2397_v0, 0.0  ;;  %v139_v62 = vld [vmem:[%s5764_s0 + $0x3c8] sm:$0xff] }
  0xeb   :  { %v2655_v7 = vsel %vm278_vm0, %v2396_v1, 0.0  ;;  %v3870_v8 = vpop.f32.mrb[6].mxu0  ;;  %v5286_v17 = vpop.f32.mrb[6].mxu1  ;;  %v140_v1 = vld [vmem:[%s5764_s0 + $0x3d0] sm:$0xff] }
  0xec   :  { %v2656_v10 = vadd.f32 %v2655_v7, %v2654_v4  ;;  %v1143_v11 = vpop.f32.mrb[7].mxu0  ;;  %4028 = vmatmul.mubr.msk.f32.gmra.mrb[112].mxu0 %vm278_vm0, %v131_v2  ;;  %v2399_v14 = vmax.f32 %v3870_v8, 0.0  ;;  %v5292_v20 = vpop.f32.mrb[7].mxu1  ;;  %v269_v7 = vld [vmem:[%s5764_s0 + $0x7d8] sm:$0xff] }
  0xed   :  { %v2398_v15 = vmax.f32 %v1143_v11, 0.0  ;;  %4030 = vmatprep.mubr.msk.f32.mxu0 %vm278_vm0, %v132_v5  ;;  %4223 = vmatmul.mubr.msk.f32.gmra.mrb[112].mxu1 %vm278_vm0, %v261_v9 }
  0xee   :  { %v2658_v18 = vadd.f32 %v2657_v13, %v2656_v10  ;;  %4225 = vmatprep.mubr.msk.f32.mxu1 %vm278_vm0, %v262_v12  ;;  %v2661_v27 = vsel %vm278_vm0, %v2399_v14, 0.0  ;;  %v270_v10 = vld [vmem:[%s5764_s0 + $0x7e0] sm:$0xff]  ;;  %v141_v14 = vld [vmem:[%s5764_s0 + $0x3d8] sm:$0xff] }
  0xef   :  { %v2659_v21 = vsel %vm278_vm0, %v2398_v15, 0.0  ;;  %v3873_v22 = vpop.f32.mrb[8].mxu0  ;;  %v5308_v31 = vpop.f32.mrb[8].mxu1 }
  0xf0   :  { %v2660_v24 = vadd.f32 %v2659_v21, %v2658_v18  ;;  %v1153_v25 = vpop.f32.mrb[9].mxu0  ;;  %4031 = vmatmul.mubr.msk.f32.gmra.mrb[114].mxu0 %vm278_vm0, %v133_v16  ;;  %v2401_v28 = vmax.f32 %v3873_v22, 0.0  ;;  %v5314_v34 = vpop.f32.mrb[9].mxu1  ;;  %v142_v18 = vld [vmem:[%s5764_s0 + $0x3e0] sm:$0xff] }
  0xf1   :  { %v2400_v29 = vmax.f32 %v1153_v25, 0.0  ;;  %4033 = vmatprep.mubr.msk.f32.mxu0 %vm278_vm0, %v134_v19  ;;  %4226 = vmatmul.mubr.msk.f32.gmra.mrb[114].mxu1 %vm278_vm0, %v263_v23  ;;  %v271_v23 = vld [vmem:[%s5764_s0 + $0x7e8] sm:$0xff] }
  0xf2   :  { %v2662_v32 = vadd.f32 %v2661_v27, %v2660_v24  ;;  %4228 = vmatprep.mubr.msk.f32.mxu1 %vm278_vm0, %v264_v26  ;;  %v2665_v42 = vsel %vm278_vm0, %v2401_v28, 0.0  ;;  %v272_v26 = vld [vmem:[%s5764_s0 + $0x7f0] sm:$0xff] }
  0xf3   :  { %v2663_v35 = vsel %vm278_vm0, %v2400_v29, 0.0  ;;  %v3876_v36 = vpop.f32.mrb[10].mxu0  ;;  %v5330_v47 = vpop.f32.mrb[10].mxu1 }
  0xf4   :  { %v2664_v38 = vadd.f32 %v2663_v35, %v2662_v32  ;;  %v1163_v39 = vpop.f32.mrb[11].mxu0  ;;  %4034 = vmatmul.mubr.msk.f32.gmra.mrb[116].mxu0 %vm278_vm0, %v135_v30  ;;  %v2403_v43 = vmax.f32 %v3876_v36, 0.0  ;;  %v5336_v50 = vpop.f32.mrb[11].mxu1  ;;  %v143_v30 = vld [vmem:[%s5764_s0 + $0x3e8] sm:$0xff]  ;;  %v144_v35 = vld [vmem:[%s5764_s0 + $0x3f0] sm:$0xff] }
  0xf5   :  { %v2402_v45 = vmax.f32 %v1163_v39, 0.0  ;;  %4036 = vmatprep.mubr.msk.f32.mxu0 %vm278_vm0, %v136_v33  ;;  %4229 = vmatmul.mubr.msk.f32.gmra.mrb[116].mxu1 %vm278_vm0, %v265_v37  ;;  %v273_v39 = vld [vmem:[%s5764_s0 + $0x7f8] sm:$0xff] }
  0xf6   :  { %v2666_v48 = vadd.f32 %v2665_v42, %v2664_v38  ;;  %4231 = vmatprep.mubr.msk.f32.mxu1 %vm278_vm0, %v266_v40  ;;  %v2669_v59 = vsel %vm278_vm0, %v2403_v43, 0.0 }
  0xf7   :  { %v2667_v51 = vsel %vm278_vm0, %v2402_v45, 0.0  ;;  %v3879_v52 = vpop.f32.mrb[12].mxu0  ;;  %v5352_v63 = vpop.f32.mrb[12].mxu1 }
  0xf8   :  { %v2668_v55 = vadd.f32 %v2667_v51, %v2666_v48  ;;  %v1173_v57 = vpop.f32.mrb[13].mxu0  ;;  %4037 = vmatmul.mubr.msk.f32.gmra.mrb[118].mxu0 %vm278_vm0, %v137_v46  ;;  %v2405_v60 = vmax.f32 %v3879_v52, 0.0  ;;  %v5358_v2 = vpop.f32.mrb[13].mxu1  ;;  %v145_v48 = vld [vmem:[%s5764_s0 + $0x3f8] sm:$0xff]  ;;  %v146_v52 = vld [vmem:[%s5764_s0 + $0x400] sm:$0xff] }
  0xf9   :  { %v2404_v61 = vmax.f32 %v1173_v57, 0.0  ;;  %4039 = vmatprep.mubr.msk.f32.mxu0 %vm278_vm0, %v138_v49  ;;  %4232 = vmatmul.mubr.msk.f32.gmra.mrb[118].mxu1 %vm278_vm0, %v267_v53 }
  0xfa   :  { %v2670_v0 = vadd.f32 %v2669_v59, %v2668_v55  ;;  %4234 = vmatprep.mubr.msk.f32.mxu1 %vm278_vm0, %v268_v58  ;;  %v2673_v11 = vsel %vm278_vm0, %v2405_v60, 0.0 }
  0xfb   :  { %v2671_v4 = vsel %vm278_vm0, %v2404_v61, 0.0  ;;  %v3882_v5 = vpop.f32.mrb[14].mxu0  ;;  %v5374_v15 = vpop.f32.mrb[14].mxu1 }
  0xfc   :  { %v2672_v8 = vadd.f32 %v2671_v4, %v2670_v0  ;;  %v1183_v9 = vpop.f32.mrb[15].mxu0  ;;  %4040 = vmatmul.mubr.msk.f32.gmra.mrb[120].mxu0 %vm278_vm0, %v139_v62  ;;  %v2407_v12 = vmax.f32 %v3882_v5, 0.0  ;;  %v5380_v19 = vpop.f32.mrb[15].mxu1  ;;  %v147_v0 = vld [vmem:[%s5764_s0 + $0x408] sm:$0xff] }
  0xfd   :  { %v2406_v13 = vmax.f32 %v1183_v9, 0.0  ;;  %4042 = vmatprep.mubr.msk.f32.mxu0 %vm278_vm0, %v140_v1  ;;  %4235 = vmatmul.mubr.msk.f32.gmra.mrb[120].mxu1 %vm278_vm0, %v269_v7 }
  0xfe   :  { %v2674_v16 = vadd.f32 %v2673_v11, %v2672_v8  ;;  %4237 = vmatprep.mubr.msk.f32.mxu1 %vm278_vm0, %v270_v10  ;;  %v2677_v27 = vsel %vm278_vm0, %v2407_v12, 0.0 }
  0xff   :  { %v2675_v21 = vsel %vm278_vm0, %v2406_v13, 0.0  ;;  %v3885_v22 = vpop.f32.mrb[16].mxu0  ;;  %v5396_v32 = vpop.f32.mrb[16].mxu1 }
 0x100   :  { %v2676_v24 = vadd.f32 %v2675_v21, %v2674_v16  ;;  %v1193_v25 = vpop.f32.mrb[17].mxu0  ;;  %4043 = vmatmul.mubr.msk.f32.gmra.mrb[122].mxu0 %vm278_vm0, %v141_v14  ;;  %v2409_v28 = vmax.f32 %v3885_v22, 0.0  ;;  %v5402_v36 = vpop.f32.mrb[17].mxu1 }
 0x101   :  { %v2408_v29 = vmax.f32 %v1193_v25, 0.0  ;;  %4045 = vmatprep.mubr.msk.f32.mxu0 %vm278_vm0, %v142_v18  ;;  %4238 = vmatmul.mubr.msk.f32.gmra.mrb[122].mxu1 %vm278_vm0, %v271_v23 }
 0x102   :  { %v2678_v33 = vadd.f32 %v2677_v27, %v2676_v24  ;;  %4240 = vmatprep.mubr.msk.f32.mxu1 %vm278_vm0, %v272_v26  ;;  %v2681_v43 = vsel %vm278_vm0, %v2409_v28, 0.0 }
 0x103   :  { %v2679_v37 = vsel %vm278_vm0, %v2408_v29, 0.0  ;;  %v3888_v38 = vpop.f32.mrb[18].mxu0 }
 0x104   :  { %v2680_v40 = vadd.f32 %v2679_v37, %v2678_v33  ;;  %v1203_v42 = vpop.f32.mrb[19].mxu0  ;;  %4046 = vmatmul.mubr.msk.f32.gmra.mrb[124].mxu0 %vm278_vm0, %v143_v30  ;;  %v2411_v45 = vmax.f32 %v3888_v38, 0.0  ;;  %v5415_v49 = vpop.f32.mrb[18].mxu1 }
 0x105   :  { %v2410_v46 = vmax.f32 %v1203_v42, 0.0  ;;  %4048 = vmatprep.mubr.msk.f32.mxu0 %vm278_vm0, %v144_v35  ;;  %4241 = vmatmul.mubr.msk.f32.gmra.mrb[124].mxu1 %vm278_vm0, %v273_v39  ;;  %v5421_v53 = vpop.f32.mrb[19].mxu1 }
 0x106   :  { %v2682_v51 = vadd.f32 %v2681_v43, %v2680_v40  ;;  %v2685_v60 = vsel %vm278_vm0, %v2411_v45, 0.0 }
 0x107   :  { %v2683_v55 = vsel %vm278_vm0, %v2410_v46, 0.0  ;;  %v3891_v57 = vpop.f32.mrb[20].mxu0 }
 0x108   :  { %v2684_v58 = vadd.f32 %v2683_v55, %v2682_v51  ;;  %v1213_v59 = vpop.f32.mrb[21].mxu0  ;;  %4049 = vmatmul.mubr.msk.f32.gmra.mrb[126].mxu0 %vm278_vm0, %v145_v48  ;;  %v2413_v61 = vmax.f32 %v3891_v57, 0.0  ;;  %v5430_v1 = vpop.f32.mrb[20].mxu1 }
 0x109   :  { %v2412_v62 = vmax.f32 %v1213_v59, 0.0  ;;  %4051 = vmatprep.mubr.msk.f32.mxu0 %vm278_vm0, %v146_v52  ;;  %v5432_v5 = vpop.f32.mrb[21].mxu1 }
 0x10a   :  { %v2686_v4 = vadd.f32 %v2685_v60, %v2684_v58  ;;  %v2689_v11 = vsel %vm278_vm0, %v2413_v61, 0.0 }
 0x10b   :  { %v2687_v7 = vsel %vm278_vm0, %v2412_v62, 0.0  ;;  %v3894_v8 = vpop.f32.mrb[22].mxu0 }
 0x10c   :  { %v2688_v9 = vadd.f32 %v2687_v7, %v2686_v4  ;;  %v1223_v10 = vpop.f32.mrb[23].mxu0  ;;  %4052 = vmatmul.mubr.msk.f32.gmra.mrb[128].mxu0 %vm278_vm0, %v147_v0  ;;  %v2415_v12 = vmax.f32 %v3894_v8, 0.0  ;;  %v5437_v14 = vpop.f32.mrb[22].mxu1 }
 0x10d   :  { %v2414_v13 = vmax.f32 %v1223_v10, 0.0  ;;  %v5439_v18 = vpop.f32.mrb[23].mxu1 }
 0x10e   :  { %v2690_v16 = vadd.f32 %v2689_v11, %v2688_v9  ;;  %v2693_v25 = vsel %vm278_vm0, %v2415_v12, 0.0 }
 0x10f   :  { %v2691_v21 = vsel %vm278_vm0, %v2414_v13, 0.0  ;;  %v3897_v22 = vpop.f32.mrb[24].mxu0 }
 0x110   :  { %v2692_v23 = vadd.f32 %v2691_v21, %v2690_v16  ;;  %v1233_v24 = vpop.f32.mrb[25].mxu0  ;;  %v2417_v26 = vmax.f32 %v3897_v22, 0.0  ;;  %v5443_v28 = vpop.f32.mrb[24].mxu1 }
 0x111   :  { %v2416_v27 = vmax.f32 %v1233_v24, 0.0  ;;  %v5445_v30 = vpop.f32.mrb[25].mxu1 }
 0x112   :  { %v2694_v29 = vadd.f32 %v2693_v25, %v2692_v23  ;;  %v2697_v39 = vsel %vm278_vm0, %v2417_v26, 0.0 }
 0x113   :  { %v2695_v33 = vsel %vm278_vm0, %v2416_v27, 0.0  ;;  %v3900_v35 = vpop.f32.mrb[26].mxu0 }
 0x114   :  { %v2696_v37 = vadd.f32 %v2695_v33, %v2694_v29  ;;  %v1243_v38 = vpop.f32.mrb[27].mxu0  ;;  %v2419_v40 = vmax.f32 %v3900_v35, 0.0  ;;  %v5449_v43 = vpop.f32.mrb[26].mxu1 }
 0x115   :  { %v2418_v42 = vmax.f32 %v1243_v38, 0.0  ;;  %v5451_v46 = vpop.f32.mrb[27].mxu1 }
 0x116   :  { %v2698_v45 = vadd.f32 %v2697_v39, %v2696_v37  ;;  %v2701_v57 = vsel %vm278_vm0, %v2419_v40, 0.0 }
 0x117   :  { %v2699_v48 = vsel %vm278_vm0, %v2418_v42, 0.0  ;;  %v3903_v51 = vpop.f32.mrb[28].mxu0 }
 0x118   :  { %v2700_v52 = vadd.f32 %v2699_v48, %v2698_v45  ;;  %v1253_v55 = vpop.f32.mrb[29].mxu0  ;;  %v2421_v58 = vmax.f32 %v3903_v51, 0.0  ;;  %v5455_v60 = vpop.f32.mrb[28].mxu1 }
 0x119   :  { %v2420_v59 = vmax.f32 %v1253_v55, 0.0  ;;  %v5457_v62 = vpop.f32.mrb[29].mxu1 }
 0x11a   :  { %v2702_v61 = vadd.f32 %v2701_v57, %v2700_v52  ;;  %v2705_v9 = vsel %vm278_vm0, %v2421_v58, 0.0 }
 0x11b   :  { %v2703_v0 = vsel %vm278_vm0, %v2420_v59, 0.0  ;;  %v3906_v4 = vpop.f32.mrb[30].mxu0 }
 0x11c   :  { %v2704_v7 = vadd.f32 %v2703_v0, %v2702_v61  ;;  %v1263_v8 = vpop.f32.mrb[31].mxu0  ;;  %v2423_v10 = vmax.f32 %v3906_v4, 0.0  ;;  %v4101_v12 = vpop.f32.mrb[30].mxu1 }
 0x11d   :  { %v2422_v11 = vmax.f32 %v1263_v8, 0.0  ;;  %v2553_v16 = vmax.f32 %v4101_v12, 0.0  ;;  %v1913_v21 = vpop.f32.mrb[31].mxu1 }
 0x11e   :  { %v2706_v13 = vadd.f32 %v2705_v9, %v2704_v7  ;;  %v2552_v24 = vmax.f32 %v1913_v21, 0.0  ;;  %v2709_v33 = vsel %vm278_vm0, %v2423_v10, 0.0 }
 0x11f   :  { %v2707_v22 = vsel %vm278_vm0, %v2422_v11, 0.0  ;;  %v3909_v23 = vpop.f32.mrb[32].mxu0  ;;  %v2994_v29 = vsel %vm278_vm0, %v2553_v16, 0.0 }
 0x120   :  { %v2708_v25 = vadd.f32 %v2707_v22, %v2706_v13  ;;  %v2425_v26 = vmax.f32 %v3909_v23, 0.0  ;;  %v1273_v27 = vpop.f32.mrb[33].mxu0  ;;  %v2993_v37 = vsel %vm278_vm0, %v2552_v24, 0.0  ;;  %v4104_v38 = vpop.f32.mrb[32].mxu1 }
 0x121   :  { %v2424_v35 = vmax.f32 %v1273_v27, 0.0  ;;  %v2995_v42 = vadd.f32 %v2994_v29, %v2993_v37  ;;  %v2555_v45 = vmax.f32 %v4104_v38, 0.0  ;;  %v1923_v48 = vpop.f32.mrb[33].mxu1 }
 0x122   :  { %v5465_v39 = vadd.f32 %v2709_v33, %v2708_v25  ;;  %v2718_v40 = vsel %vm278_vm0, %v2425_v26, 0.0  ;;  %v2554_v55 = vmax.f32 %v1923_v48, 0.0 }
 0x123   :  { %v2717_v51 = vsel %vm278_vm0, %v2424_v35, 0.0  ;;  %v3912_v52 = vpop.f32.mrb[34].mxu0  ;;  %v2998_v7 = vsel %vm278_vm0, %v2555_v45, 0.0 }
 0x124   :  { %v2719_v57 = vadd.f32 %v2718_v40, %v2717_v51  ;;  %v2427_v58 = vmax.f32 %v3912_v52, 0.0  ;;  %v1283_v59 = vpop.f32.mrb[35].mxu0  ;;  %v2996_v0 = vsel %vm278_vm0, %v2554_v55, 0.0  ;;  %v4107_v4 = vpop.f32.mrb[34].mxu1 }
 0x125   :  { %v2426_v61 = vmax.f32 %v1283_v59, 0.0  ;;  %v2997_v8 = vadd.f32 %v2996_v0, %v2995_v42  ;;  %v2557_v9 = vmax.f32 %v4107_v4, 0.0  ;;  %v1933_v10 = vpop.f32.mrb[35].mxu1 }
 0x126   :  { %v2556_v13 = vmax.f32 %v1933_v10, 0.0  ;;  %v2722_v16 = vsel %vm278_vm0, %v2427_v58, 0.0 }
 0x127   :  { %v2720_v11 = vsel %vm278_vm0, %v2426_v61, 0.0  ;;  %v3915_v12 = vpop.f32.mrb[36].mxu0  ;;  %v2999_v25 = vadd.f32 %v2998_v7, %v2997_v8  ;;  %v3002_v33 = vsel %vm278_vm0, %v2557_v9, 0.0 }
 0x128   :  { %v2721_v21 = vadd.f32 %v2720_v11, %v2719_v57  ;;  %v1293_v22 = vpop.f32.mrb[37].mxu0  ;;  %v2429_v23 = vmax.f32 %v3915_v12, 0.0  ;;  %v3000_v26 = vsel %vm278_vm0, %v2556_v13, 0.0  ;;  %v4110_v27 = vpop.f32.mrb[36].mxu1 }
 0x129   :  { %v2428_v24 = vmax.f32 %v1293_v22, 0.0  ;;  %v2559_v35 = vmax.f32 %v4110_v27, 0.0  ;;  %v1943_v37 = vpop.f32.mrb[37].mxu1  ;;  %v3001_v42 = vadd.f32 %v3000_v26, %v2999_v25 }
 0x12a   :  { %v2723_v29 = vadd.f32 %v2722_v16, %v2721_v21  ;;  %v2558_v45 = vmax.f32 %v1943_v37, 0.0  ;;  %v2726_v55 = vsel %vm278_vm0, %v2429_v23, 0.0 }
 0x12b   :  { %v2724_v38 = vsel %vm278_vm0, %v2428_v24, 0.0  ;;  %v3918_v40 = vpop.f32.mrb[38].mxu0  ;;  %v3003_v58 = vadd.f32 %v3002_v33, %v3001_v42  ;;  %v3006_v4 = vsel %vm278_vm0, %v2559_v35, 0.0 }
 0x12c   :  { %v2725_v48 = vadd.f32 %v2724_v38, %v2723_v29  ;;  %v2431_v51 = vmax.f32 %v3918_v40, 0.0  ;;  %v1303_v52 = vpop.f32.mrb[39].mxu0  ;;  %v3004_v59 = vsel %vm278_vm0, %v2558_v45, 0.0  ;;  %v4113_v61 = vpop.f32.mrb[38].mxu1 }
 0x12d   :  { %v2430_v57 = vmax.f32 %v1303_v52, 0.0  ;;  %v2561_v7 = vmax.f32 %v4113_v61, 0.0  ;;  %v1953_v8 = vpop.f32.mrb[39].mxu1  ;;  %v3005_v11 = vadd.f32 %v3004_v59, %v3003_v58 }
 0x12e   :  { %v2727_v0 = vadd.f32 %v2726_v55, %v2725_v48  ;;  %v2560_v12 = vmax.f32 %v1953_v8, 0.0  ;;  %v2730_v13 = vsel %vm278_vm0, %v2431_v51, 0.0 }
 0x12f   :  { %v2728_v9 = vsel %vm278_vm0, %v2430_v57, 0.0  ;;  %v3921_v10 = vpop.f32.mrb[40].mxu0  ;;  %v3007_v24 = vadd.f32 %v3006_v4, %v3005_v11  ;;  %v3010_v29 = vsel %vm278_vm0, %v2561_v7, 0.0 }
 0x130   :  { %v2729_v16 = vadd.f32 %v2728_v9, %v2727_v0  ;;  %v1313_v21 = vpop.f32.mrb[41].mxu0  ;;  %v2433_v22 = vmax.f32 %v3921_v10, 0.0  ;;  %v3008_v25 = vsel %vm278_vm0, %v2560_v12, 0.0  ;;  %v4116_v26 = vpop.f32.mrb[40].mxu1 }
 0x131   :  { %v2432_v23 = vmax.f32 %v1313_v21, 0.0  ;;  %v2563_v33 = vmax.f32 %v4116_v26, 0.0  ;;  %v1963_v35 = vpop.f32.mrb[41].mxu1  ;;  %v3009_v40 = vadd.f32 %v3008_v25, %v3007_v24 }
 0x132   :  { %v2731_v27 = vadd.f32 %v2730_v13, %v2729_v16  ;;  %v2562_v42 = vmax.f32 %v1963_v35, 0.0  ;;  %v2734_v52 = vsel %vm278_vm0, %v2433_v22, 0.0  ;;  %v3210_v22 = vld [vmem:[%s5766_s2 + $0x10] sm:$0xff] }
 0x133   :  { %v2732_v37 = vsel %vm278_vm0, %v2432_v23, 0.0  ;;  %v3924_v38 = vpop.f32.mrb[42].mxu0  ;;  %v3011_v57 = vadd.f32 %v3010_v29, %v3009_v40  ;;  %v3014_v0 = vsel %vm278_vm0, %v2563_v33, 0.0  ;;  %v3211_v23 = vld [vmem:[%s5766_s2 + $0x18] sm:$0xff] }
 0x134   :  { %v2733_v45 = vadd.f32 %v2732_v37, %v2731_v27  ;;  %v2435_v48 = vmax.f32 %v3924_v38, 0.0  ;;  %v1323_v51 = vpop.f32.mrb[43].mxu0  ;;  %v3012_v58 = vsel %vm278_vm0, %v2562_v42, 0.0  ;;  %v4119_v59 = vpop.f32.mrb[42].mxu1  ;;  %v4266_v29 = vpack.c.bf16 %v3211_v23, %v3210_v22 }
 0x135   :  { %v2434_v55 = vmax.f32 %v1323_v51, 0.0  ;;  %v2565_v4 = vmax.f32 %v4119_v59, 0.0  ;;  %v1973_v7 = vpop.f32.mrb[43].mxu1  ;;  %v3013_v10 = vadd.f32 %v3012_v58, %v3011_v57 }
 0x136   :  { %v2735_v61 = vadd.f32 %v2734_v52, %v2733_v45  ;;  %v2564_v11 = vmax.f32 %v1973_v7, 0.0  ;;  %v2738_v12 = vsel %vm278_vm0, %v2435_v48, 0.0  ;;  %4267 = vmatpush3.bf16.msra.mxu1 %v4266_v29 }
 0x137   :  { %v2736_v8 = vsel %vm278_vm0, %v2434_v55, 0.0  ;;  %v3927_v9 = vpop.f32.mrb[44].mxu0  ;;  %v3015_v25 = vadd.f32 %v3014_v0, %v3013_v10  ;;  %v3018_v35 = vsel %vm278_vm0, %v2565_v4, 0.0 }
 0x138   :  { %v2737_v13 = vadd.f32 %v2736_v8, %v2735_v61  ;;  %v2437_v16 = vmax.f32 %v3927_v9, 0.0  ;;  %v1333_v21 = vpop.f32.mrb[45].mxu0  ;;  %v3016_v26 = vsel %vm278_vm0, %v2564_v11, 0.0  ;;  %v4122_v27 = vpop.f32.mrb[44].mxu1 }
 0x139   :  { %v2436_v24 = vmax.f32 %v1333_v21, 0.0  ;;  %v2567_v37 = vmax.f32 %v4122_v27, 0.0  ;;  %v1983_v38 = vpop.f32.mrb[45].mxu1  ;;  %v3017_v45 = vadd.f32 %v3016_v26, %v3015_v25 }
 0x13a   :  { %v2739_v33 = vadd.f32 %v2738_v12, %v2737_v13  ;;  %v2566_v48 = vmax.f32 %v1983_v38, 0.0  ;;  %v2742_v51 = vsel %vm278_vm0, %v2437_v16, 0.0 }
 0x13b   :  { %v2740_v40 = vsel %vm278_vm0, %v2436_v24, 0.0  ;;  %v3930_v42 = vpop.f32.mrb[46].mxu0  ;;  %v3019_v59 = vadd.f32 %v3018_v35, %v3017_v45  ;;  %v3022_v4 = vsel %vm278_vm0, %v2567_v37, 0.0 }
 0x13c   :  { %v2741_v52 = vadd.f32 %v2740_v40, %v2739_v33  ;;  %v1343_v55 = vpop.f32.mrb[47].mxu0  ;;  %v2439_v57 = vmax.f32 %v3930_v42, 0.0  ;;  %v3020_v61 = vsel %vm278_vm0, %v2566_v48, 0.0  ;;  %v4125_v0 = vpop.f32.mrb[46].mxu1 }
 0x13d   :  { %v2438_v58 = vmax.f32 %v1343_v55, 0.0  ;;  %v2569_v8 = vmax.f32 %v4125_v0, 0.0  ;;  %v1993_v9 = vpop.f32.mrb[47].mxu1  ;;  %v3021_v12 = vadd.f32 %v3020_v61, %v3019_v59 }
 0x13e   :  { %v2743_v7 = vadd.f32 %v2742_v51, %v2741_v52  ;;  %v2568_v13 = vmax.f32 %v1993_v9, 0.0  ;;  %v2746_v23 = vsel %vm278_vm0, %v2439_v57, 0.0 }
 0x13f   :  { %v2744_v10 = vsel %vm278_vm0, %v2438_v58, 0.0  ;;  %v3933_v11 = vpop.f32.mrb[48].mxu0  ;;  %v3023_v25 = vadd.f32 %v3022_v4, %v3021_v12  ;;  %v3026_v33 = vsel %vm278_vm0, %v2569_v8, 0.0 }
 0x140   :  { %v2745_v21 = vadd.f32 %v2744_v10, %v2743_v7  ;;  %v2441_v16 = vmax.f32 %v3933_v11, 0.0  ;;  %v1353_v22 = vpop.f32.mrb[49].mxu0  ;;  %v3024_v26 = vsel %vm278_vm0, %v2568_v13, 0.0  ;;  %v4128_v27 = vpop.f32.mrb[48].mxu1 }
 0x141   :  { %v2440_v24 = vmax.f32 %v1353_v22, 0.0  ;;  %v2571_v35 = vmax.f32 %v4128_v27, 0.0  ;;  %v2003_v37 = vpop.f32.mrb[49].mxu1  ;;  %v3025_v42 = vadd.f32 %v3024_v26, %v3023_v25 }
 0x142   :  { %v2747_v29 = vadd.f32 %v2746_v23, %v2745_v21  ;;  %v2570_v45 = vmax.f32 %v2003_v37, 0.0  ;;  %v2750_v48 = vsel %vm278_vm0, %v2441_v16, 0.0 }
 0x143   :  { %v2748_v38 = vsel %vm278_vm0, %v2440_v24, 0.0  ;;  %v3936_v40 = vpop.f32.mrb[50].mxu0  ;;  %v3027_v58 = vadd.f32 %v3026_v33, %v3025_v42  ;;  %v3030_v7 = vsel %vm278_vm0, %v2571_v35, 0.0 }
 0x144   :  { %v2749_v51 = vadd.f32 %v2748_v38, %v2747_v29  ;;  %v1363_v52 = vpop.f32.mrb[51].mxu0  ;;  %v2443_v55 = vmax.f32 %v3936_v40, 0.0  ;;  %v3028_v59 = vsel %vm278_vm0, %v2570_v45, 0.0  ;;  %v4131_v61 = vpop.f32.mrb[50].mxu1 }
 0x145   :  { %v2442_v57 = vmax.f32 %v1363_v52, 0.0  ;;  %v2573_v4 = vmax.f32 %v4131_v61, 0.0  ;;  %v2013_v8 = vpop.f32.mrb[51].mxu1  ;;  %v3029_v11 = vadd.f32 %v3028_v59, %v3027_v58 }
 0x146   :  { %v2751_v0 = vadd.f32 %v2750_v48, %v2749_v51  ;;  %v2572_v12 = vmax.f32 %v2013_v8, 0.0  ;;  %v2754_v22 = vsel %vm278_vm0, %v2443_v55, 0.0 }
 0x147   :  { %v2752_v9 = vsel %vm278_vm0, %v2442_v57, 0.0  ;;  %v3939_v10 = vpop.f32.mrb[52].mxu0  ;;  %v3031_v24 = vadd.f32 %v3030_v7, %v3029_v11  ;;  %v3034_v29 = vsel %vm278_vm0, %v2573_v4, 0.0 }
 0x148   :  { %v2753_v13 = vadd.f32 %v2752_v9, %v2751_v0  ;;  %v2445_v21 = vmax.f32 %v3939_v10, 0.0  ;;  %v1373_v16 = vpop.f32.mrb[53].mxu0  ;;  %v3032_v25 = vsel %vm278_vm0, %v2572_v12, 0.0  ;;  %v4134_v26 = vpop.f32.mrb[52].mxu1 }
 0x149   :  { %v2444_v23 = vmax.f32 %v1373_v16, 0.0  ;;  %v2575_v33 = vmax.f32 %v4134_v26, 0.0  ;;  %v2023_v35 = vpop.f32.mrb[53].mxu1  ;;  %v3033_v40 = vadd.f32 %v3032_v25, %v3031_v24 }
 0x14a   :  { %v2755_v27 = vadd.f32 %v2754_v22, %v2753_v13  ;;  %v2574_v42 = vmax.f32 %v2023_v35, 0.0  ;;  %v2758_v45 = vsel %vm278_vm0, %v2445_v21, 0.0 }
 0x14b   :  { %v2756_v37 = vsel %vm278_vm0, %v2444_v23, 0.0  ;;  %v3942_v38 = vpop.f32.mrb[54].mxu0  ;;  %v3035_v57 = vadd.f32 %v3034_v29, %v3033_v40  ;;  %v3038_v0 = vsel %vm278_vm0, %v2575_v33, 0.0 }
 0x14c   :  { %v2757_v48 = vadd.f32 %v2756_v37, %v2755_v27  ;;  %v1383_v51 = vpop.f32.mrb[55].mxu0  ;;  %v2447_v52 = vmax.f32 %v3942_v38, 0.0  ;;  %v3036_v58 = vsel %vm278_vm0, %v2574_v42, 0.0  ;;  %v4137_v59 = vpop.f32.mrb[54].mxu1 }
 0x14d   :  { %v2446_v55 = vmax.f32 %v1383_v51, 0.0  ;;  %v2577_v7 = vmax.f32 %v4137_v59, 0.0  ;;  %v2033_v4 = vpop.f32.mrb[55].mxu1  ;;  %v3037_v10 = vadd.f32 %v3036_v58, %v3035_v57 }
 0x14e   :  { %v2759_v61 = vadd.f32 %v2758_v45, %v2757_v48  ;;  %v2576_v11 = vmax.f32 %v2033_v4, 0.0  ;;  %v2762_v16 = vsel %vm278_vm0, %v2447_v52, 0.0 }
 0x14f   :  { %v2760_v8 = vsel %vm278_vm0, %v2446_v55, 0.0  ;;  %v3945_v9 = vpop.f32.mrb[56].mxu0  ;;  %v3039_v23 = vadd.f32 %v3038_v0, %v3037_v10  ;;  %v3042_v27 = vsel %vm278_vm0, %v2577_v7, 0.0 }
 0x150   :  { %v2761_v12 = vadd.f32 %v2760_v8, %v2759_v61  ;;  %v2449_v13 = vmax.f32 %v3945_v9, 0.0  ;;  %v1393_v21 = vpop.f32.mrb[57].mxu0  ;;  %v3040_v24 = vsel %vm278_vm0, %v2576_v11, 0.0  ;;  %v4140_v25 = vpop.f32.mrb[56].mxu1  ;;  %v2711_v11 = vrot.slane %v5465_v39, 4 }
 0x151   :  { %v2448_v22 = vmax.f32 %v1393_v21, 0.0  ;;  %v2579_v29 = vmax.f32 %v4140_v25, 0.0  ;;  %v2043_v33 = vpop.f32.mrb[57].mxu1  ;;  %v3041_v38 = vadd.f32 %v3040_v24, %v3039_v23 }
 0x152   :  { %v2763_v26 = vadd.f32 %v2762_v16, %v2761_v12  ;;  %v2578_v40 = vmax.f32 %v2043_v33, 0.0  ;;  %v2766_v42 = vsel %vm278_vm0, %v2449_v13, 0.0 }
 0x153   :  { %v2764_v35 = vsel %vm278_vm0, %v2448_v22, 0.0  ;;  %v3948_v37 = vpop.f32.mrb[58].mxu0  ;;  %v3043_v55 = vadd.f32 %v3042_v27, %v3041_v38  ;;  %v3046_v61 = vsel %vm278_vm0, %v2579_v29, 0.0 }
 0x154   :  { %v2765_v45 = vadd.f32 %v2764_v35, %v2763_v26  ;;  %v1403_v48 = vpop.f32.mrb[59].mxu0  ;;  %v2451_v51 = vmax.f32 %v3948_v37, 0.0  ;;  %v3044_v57 = vsel %vm278_vm0, %v2578_v40, 0.0  ;;  %v4143_v58 = vpop.f32.mrb[58].mxu1 }
 0x155   :  { %v2450_v52 = vmax.f32 %v1403_v48, 0.0  ;;  %v2581_v0 = vmax.f32 %v4143_v58, 0.0  ;;  %v2053_v7 = vpop.f32.mrb[59].mxu1  ;;  %v3045_v9 = vadd.f32 %v3044_v57, %v3043_v55 }
 0x156   :  { %v2767_v59 = vadd.f32 %v2766_v42, %v2765_v45  ;;  %v2580_v10 = vmax.f32 %v2053_v7, 0.0  ;;  %v2770_v16 = vsel %vm278_vm0, %v2451_v51, 0.0  ;;  %v2712_v42 = vadd.f32 %v2711_v11, %v5465_v39 }
 0x157   :  { %v2768_v4 = vsel %vm278_vm0, %v2450_v52, 0.0  ;;  %v3951_v8 = vpop.f32.mrb[60].mxu0  ;;  %v3047_v23 = vadd.f32 %v3046_v61, %v3045_v9  ;;  %v3050_v27 = vsel %vm278_vm0, %v2581_v0, 0.0 }
 0x158   :  { %v2769_v12 = vadd.f32 %v2768_v4, %v2767_v59  ;;  %v2453_v13 = vmax.f32 %v3951_v8, 0.0  ;;  %v1413_v21 = vpop.f32.mrb[61].mxu0  ;;  %v3048_v24 = vsel %vm278_vm0, %v2580_v10, 0.0  ;;  %v4146_v25 = vpop.f32.mrb[60].mxu1  ;;  %v2713_v11 = vrot.slane %v2712_v42, 2 }
 0x159   :  { %v2452_v22 = vmax.f32 %v1413_v21, 0.0  ;;  %v2583_v29 = vmax.f32 %v4146_v25, 0.0  ;;  %v2063_v33 = vpop.f32.mrb[61].mxu1  ;;  %v3049_v38 = vadd.f32 %v3048_v24, %v3047_v23 }
 0x15a   :  { %v2771_v26 = vadd.f32 %v2770_v16, %v2769_v12  ;;  %v2582_v40 = vmax.f32 %v2063_v33, 0.0  ;;  %v2774_v45 = vsel %vm278_vm0, %v2453_v13, 0.0 }
 0x15b   :  { %v2772_v35 = vsel %vm278_vm0, %v2452_v22, 0.0  ;;  %v3954_v37 = vpop.f32.mrb[62].mxu0  ;;  %v3051_v57 = vadd.f32 %v3050_v27, %v3049_v38  ;;  %v3054_v0 = vsel %vm278_vm0, %v2583_v29, 0.0 }
 0x15c   :  { %v2773_v48 = vadd.f32 %v2772_v35, %v2771_v26  ;;  %v1423_v51 = vpop.f32.mrb[63].mxu0  ;;  %v2455_v52 = vmax.f32 %v3954_v37, 0.0  ;;  %v3052_v58 = vsel %vm278_vm0, %v2582_v40, 0.0  ;;  %v4149_v59 = vpop.f32.mrb[62].mxu1 }
 0x15d   :  { %v2454_v55 = vmax.f32 %v1423_v51, 0.0  ;;  %v2585_v7 = vmax.f32 %v4149_v59, 0.0  ;;  %v2073_v4 = vpop.f32.mrb[63].mxu1  ;;  %v3053_v10 = vadd.f32 %v3052_v58, %v3051_v57 }
 0x15e   :  { %v2775_v61 = vadd.f32 %v2774_v45, %v2773_v48  ;;  %v2584_v39 = vmax.f32 %v2073_v4, 0.0  ;;  %v2778_v22 = vsel %vm278_vm0, %v2455_v52, 0.0  ;;  %v2714_v48 = vadd.f32 %v2713_v11, %v2712_v42 }
 0x15f   :  { %v2776_v8 = vsel %vm278_vm0, %v2454_v55, 0.0  ;;  %v3957_v9 = vpop.f32.mrb[64].mxu0  ;;  %v3063_v16 = vsel %vm278_vm0, %v2585_v7, 0.0  ;;  %v5538_v24 = vadd.f32 %v3054_v0, %v3053_v10 }
 0x160   :  { %v2777_v12 = vadd.f32 %v2776_v8, %v2775_v61  ;;  %v2457_v13 = vmax.f32 %v3957_v9, 0.0  ;;  %v1433_v21 = vpop.f32.mrb[65].mxu0  ;;  %v3062_v25 = vsel %vm278_vm0, %v2584_v39, 0.0  ;;  %v4152_v26 = vpop.f32.mrb[64].mxu1 }
 0x161   :  { %v2456_v23 = vmax.f32 %v1433_v21, 0.0  ;;  %v3064_v33 = vadd.f32 %v3063_v16, %v3062_v25  ;;  %v2587_v35 = vmax.f32 %v4152_v26, 0.0  ;;  %v2083_v37 = vpop.f32.mrb[65].mxu1 }
 0x162   :  { %v2779_v27 = vadd.f32 %v2778_v22, %v2777_v12  ;;  %v2787_v29 = vsel %vm278_vm0, %v2457_v13, 0.0  ;;  %v2586_v45 = vmax.f32 %v2083_v37, 0.0  ;;  %v2715_v13 = vrot.slane %v2714_v48, 1 }
 0x163   :  { %v2786_v38 = vsel %vm278_vm0, %v2456_v23, 0.0  ;;  %v3960_v40 = vpop.f32.mrb[66].mxu0  ;;  %v3067_v7 = vsel %vm278_vm0, %v2587_v35, 0.0 }
 0x164   :  { %v2780_v51 = vrot.slane %v2779_v27, 4  ;;  %v2788_v55 = vadd.f32 %v2787_v29, %v2786_v38  ;;  %v1443_v52 = vpop.f32.mrb[67].mxu0  ;;  %v2459_v57 = vmax.f32 %v3960_v40, 0.0  ;;  %v3065_v59 = vsel %vm278_vm0, %v2586_v45, 0.0  ;;  %v4155_v61 = vpop.f32.mrb[66].mxu1 }
 0x165   :  { %v2458_v58 = vmax.f32 %v1443_v52, 0.0  ;;  %v3066_v4 = vadd.f32 %v3065_v59, %v3064_v33  ;;  %v2589_v8 = vmax.f32 %v4155_v61, 0.0  ;;  %v2093_v9 = vpop.f32.mrb[67].mxu1  ;;  %v2716_v52 = vadd.f32 %v2715_v13, %v2714_v48 }
 0x166   :  { %v2781_v0 = vadd.f32 %v2780_v51, %v2779_v27  ;;  %v2588_v12 = vmax.f32 %v2093_v9, 0.0  ;;  %v2791_v22 = vsel %vm278_vm0, %v2459_v57, 0.0 }
 0x167   :  { %v2789_v10 = vsel %vm278_vm0, %v2458_v58, 0.0  ;;  %v3963_v39 = vpop.f32.mrb[68].mxu0  ;;  %v3068_v25 = vadd.f32 %v3067_v7, %v3066_v4  ;;  %v3071_v35 = vsel %vm278_vm0, %v2589_v8, 0.0 }
 0x168   :  { %v2782_v42 = vrot.slane %v2781_v0, 2  ;;  %v2790_v11 = vadd.f32 %v2789_v10, %v2788_v55  ;;  %v2461_v21 = vmax.f32 %v3963_v39, 0.0  ;;  %v1453_v16 = vpop.f32.mrb[69].mxu0  ;;  %v3069_v26 = vsel %vm278_vm0, %v2588_v12, 0.0  ;;  %v4158_v27 = vpop.f32.mrb[68].mxu1 }
 0x169   :  { %v2460_v23 = vmax.f32 %v1453_v16, 0.0  ;;  %v2591_v37 = vmax.f32 %v4158_v27, 0.0  ;;  %v2103_v38 = vpop.f32.mrb[69].mxu1  ;;  %v3070_v51 = vadd.f32 %v3069_v26, %v3068_v25 }
 0x16a   :  { %v2783_v29 = vadd.f32 %v2782_v42, %v2781_v0  ;;  %v2792_v33 = vadd.f32 %v2791_v22, %v2790_v11  ;;  %v2590_v55 = vmax.f32 %v2103_v38, 0.0  ;;  %v2795_v57 = vsel %vm278_vm0, %v2461_v21, 0.0 }
 0x16b   :  { %v2793_v40 = vsel %vm278_vm0, %v2460_v23, 0.0  ;;  %v3966_v45 = vpop.f32.mrb[70].mxu0  ;;  %v3072_v9 = vadd.f32 %v3071_v35, %v3070_v51  ;;  %v3075_v12 = vsel %vm278_vm0, %v2591_v37, 0.0  ;;  %v3200_v22 = vmul.f32 0.00390625, %v2716_v52 }
 0x16c   :  { %v2784_v58 = vrot.slane %v2783_v29, 1  ;;  %v2794_v59 = vadd.f32 %v2793_v40, %v2792_v33  ;;  %v1463_v61 = vpop.f32.mrb[71].mxu0  ;;  %v2463_v7 = vmax.f32 %v3966_v45, 0.0  ;;  %v3073_v0 = vsel %vm278_vm0, %v2590_v55, 0.0  ;;  %v4161_v10 = vpop.f32.mrb[70].mxu1 }
 0x16d   :  { %v2462_v4 = vmax.f32 %v1463_v61, 0.0  ;;  %v2593_v42 = vmax.f32 %v4161_v10, 0.0  ;;  %v2113_v11 = vpop.f32.mrb[71].mxu1  ;;  %v3074_v16 = vadd.f32 %v3073_v0, %v3072_v9 }
 0x16e   :  { %v2785_v8 = vadd.f32 %v2784_v58, %v2783_v29  ;;  %v2796_v39 = vadd.f32 %v2795_v57, %v2794_v59  ;;  %v2592_v21 = vmax.f32 %v2113_v11, 0.0  ;;  %v2799_v33 = vsel %vm278_vm0, %v2463_v7, 0.0 }
 0x16f   :  { %v2797_v48 = vsel %vm278_vm0, %v2462_v4, 0.0  ;;  %v3969_v13 = vpop.f32.mrb[72].mxu0  ;;  %v3076_v29 = vadd.f32 %v3075_v12, %v3074_v16  ;;  %v3079_v51 = vsel %vm278_vm0, %v2593_v42, 0.0 }
 0x170   :  { %v3201_v23 = vmul.f32 0.00390625, %v2785_v8  ;;  %v2798_v25 = vadd.f32 %v2797_v48, %v2796_v39  ;;  %v2465_v26 = vmax.f32 %v3969_v13, 0.0  ;;  %v1473_v27 = vpop.f32.mrb[73].mxu0  ;;  %v3077_v38 = vsel %vm278_vm0, %v2592_v21, 0.0  ;;  %v4164_v37 = vpop.f32.mrb[72].mxu1 }
 0x171   :  { %v2464_v35 = vmax.f32 %v1473_v27, 0.0  ;;  %v2595_v55 = vmax.f32 %v4164_v37, 0.0  ;;  %v2123_v58 = vpop.f32.mrb[73].mxu1  ;;  %v3078_v59 = vadd.f32 %v3077_v38, %v3076_v29 }
 0x172   :  { %v5556_v40 = vsel %vm3227_vm1, %v3201_v23, %v3200_v22  ;;  %v2800_v45 = vadd.f32 %v2799_v33, %v2798_v25  ;;  %v2594_v61 = vmax.f32 %v2123_v58, 0.0  ;;  %v2803_v4 = vsel %vm278_vm0, %v2465_v26, 0.0 }
 0x173   :  { %v2801_v52 = vsel %vm278_vm0, %v2464_v35, 0.0  ;;  %v3972_v57 = vpop.f32.mrb[74].mxu0  ;;  %v3080_v8 = vadd.f32 %v3079_v51, %v3078_v59  ;;  %v3083_v42 = vsel %vm278_vm0, %v2595_v55, 0.0 }
 0x174   :  { %v2802_v7 = vadd.f32 %v2801_v52, %v2800_v45  ;;  %v1483_v9 = vpop.f32.mrb[75].mxu0  ;;  %v2467_v0 = vmax.f32 %v3972_v57, 0.0  ;;  %v3081_v39 = vsel %vm278_vm0, %v2594_v61, 0.0  ;;  %v4167_v12 = vpop.f32.mrb[74].mxu1 }
 0x175   :  { %v2466_v10 = vmax.f32 %v1483_v9, 0.0  ;;  %v2597_v48 = vmax.f32 %v4167_v12, 0.0  ;;  %v2133_v13 = vpop.f32.mrb[75].mxu1  ;;  %v3082_v22 = vadd.f32 %v3081_v39, %v3080_v8 }
 0x176   :  { %v2804_v11 = vadd.f32 %v2803_v4, %v2802_v7  ;;  %v2596_v23 = vmax.f32 %v2133_v13, 0.0  ;;  %v2807_v33 = vsel %vm278_vm0, %v2467_v0, 0.0 }
 0x177   :  { %v2805_v16 = vsel %vm278_vm0, %v2466_v10, 0.0  ;;  %v3975_v21 = vpop.f32.mrb[76].mxu0  ;;  %v3084_v29 = vadd.f32 %v3083_v42, %v3082_v22  ;;  %v3087_v51 = vsel %vm278_vm0, %v2597_v48, 0.0 }
 0x178   :  { %v2806_v25 = vadd.f32 %v2805_v16, %v2804_v11  ;;  %v2469_v26 = vmax.f32 %v3975_v21, 0.0  ;;  %v1493_v27 = vpop.f32.mrb[77].mxu0  ;;  %v3085_v38 = vsel %vm278_vm0, %v2596_v23, 0.0  ;;  %v4170_v37 = vpop.f32.mrb[76].mxu1 }
 0x179   :  { %v2468_v35 = vmax.f32 %v1493_v27, 0.0  ;;  %v2599_v55 = vmax.f32 %v4170_v37, 0.0  ;;  %v2143_v58 = vpop.f32.mrb[77].mxu1  ;;  %v3086_v59 = vadd.f32 %v3085_v38, %v3084_v29 }
 0x17a   :  { %v2808_v45 = vadd.f32 %v2807_v33, %v2806_v25  ;;  %v2598_v61 = vmax.f32 %v2143_v58, 0.0  ;;  %v2811_v4 = vsel %vm278_vm0, %v2469_v26, 0.0 }
 0x17b   :  { %v2809_v52 = vsel %vm278_vm0, %v2468_v35, 0.0  ;;  %v3978_v57 = vpop.f32.mrb[78].mxu0  ;;  %v3088_v8 = vadd.f32 %v3087_v51, %v3086_v59  ;;  %v3091_v42 = vsel %vm278_vm0, %v2599_v55, 0.0 }
 0x17c   :  { %v2810_v7 = vadd.f32 %v2809_v52, %v2808_v45  ;;  %v1503_v9 = vpop.f32.mrb[79].mxu0  ;;  %v2471_v0 = vmax.f32 %v3978_v57, 0.0  ;;  %v3089_v39 = vsel %vm278_vm0, %v2598_v61, 0.0  ;;  %v4173_v12 = vpop.f32.mrb[78].mxu1 }
 0x17d   :  { %v2470_v10 = vmax.f32 %v1503_v9, 0.0  ;;  %v2601_v48 = vmax.f32 %v4173_v12, 0.0  ;;  %v2153_v13 = vpop.f32.mrb[79].mxu1  ;;  %v3090_v22 = vadd.f32 %v3089_v39, %v3088_v8 }
 0x17e   :  { %v2812_v11 = vadd.f32 %v2811_v4, %v2810_v7  ;;  %v2600_v23 = vmax.f32 %v2153_v13, 0.0  ;;  %v2815_v33 = vsel %vm278_vm0, %v2471_v0, 0.0 }
 0x17f   :  { %v2813_v16 = vsel %vm278_vm0, %v2470_v10, 0.0  ;;  %v3981_v21 = vpop.f32.mrb[80].mxu0  ;;  %v3092_v29 = vadd.f32 %v3091_v42, %v3090_v22  ;;  %v3095_v51 = vsel %vm278_vm0, %v2601_v48, 0.0 }
 0x180   :  { %v2814_v25 = vadd.f32 %v2813_v16, %v2812_v11  ;;  %v2473_v26 = vmax.f32 %v3981_v21, 0.0  ;;  %v1513_v27 = vpop.f32.mrb[81].mxu0  ;;  %v3093_v38 = vsel %vm278_vm0, %v2600_v23, 0.0  ;;  %v4176_v37 = vpop.f32.mrb[80].mxu1 }
 0x181   :  { %v2472_v35 = vmax.f32 %v1513_v27, 0.0  ;;  %v2603_v55 = vmax.f32 %v4176_v37, 0.0  ;;  %v2163_v58 = vpop.f32.mrb[81].mxu1  ;;  %v3094_v59 = vadd.f32 %v3093_v38, %v3092_v29 }
 0x182   :  { %v2816_v45 = vadd.f32 %v2815_v33, %v2814_v25  ;;  %v2602_v61 = vmax.f32 %v2163_v58, 0.0  ;;  %v2819_v4 = vsel %vm278_vm0, %v2473_v26, 0.0 }
 0x183   :  { %v2817_v52 = vsel %vm278_vm0, %v2472_v35, 0.0  ;;  %v3984_v57 = vpop.f32.mrb[82].mxu0  ;;  %v3096_v8 = vadd.f32 %v3095_v51, %v3094_v59  ;;  %v3099_v42 = vsel %vm278_vm0, %v2603_v55, 0.0 }
 0x184   :  { %v2818_v7 = vadd.f32 %v2817_v52, %v2816_v45  ;;  %v1523_v9 = vpop.f32.mrb[83].mxu0  ;;  %v2475_v0 = vmax.f32 %v3984_v57, 0.0  ;;  %v3097_v39 = vsel %vm278_vm0, %v2602_v61, 0.0  ;;  %v4179_v12 = vpop.f32.mrb[82].mxu1 }
 0x185   :  { %v2474_v10 = vmax.f32 %v1523_v9, 0.0  ;;  %v2605_v48 = vmax.f32 %v4179_v12, 0.0  ;;  %v2173_v13 = vpop.f32.mrb[83].mxu1  ;;  %v3098_v22 = vadd.f32 %v3097_v39, %v3096_v8 }
 0x186   :  { %v2820_v11 = vadd.f32 %v2819_v4, %v2818_v7  ;;  %v2604_v23 = vmax.f32 %v2173_v13, 0.0  ;;  %v2823_v33 = vsel %vm278_vm0, %v2475_v0, 0.0 }
 0x187   :  { %v2821_v16 = vsel %vm278_vm0, %v2474_v10, 0.0  ;;  %v3987_v21 = vpop.f32.mrb[84].mxu0  ;;  %v3100_v29 = vadd.f32 %v3099_v42, %v3098_v22  ;;  %v3103_v51 = vsel %vm278_vm0, %v2605_v48, 0.0 }
 0x188   :  { %v2822_v25 = vadd.f32 %v2821_v16, %v2820_v11  ;;  %v2477_v26 = vmax.f32 %v3987_v21, 0.0  ;;  %v1533_v27 = vpop.f32.mrb[85].mxu0  ;;  %v3101_v38 = vsel %vm278_vm0, %v2604_v23, 0.0  ;;  %v4182_v37 = vpop.f32.mrb[84].mxu1  ;;  %v4302_v16 = vmov 0.0  }
 0x189   :  { %v2476_v35 = vmax.f32 %v1533_v27, 0.0  ;;  %v2607_v55 = vmax.f32 %v4182_v37, 0.0  ;;  %v2183_v58 = vpop.f32.mrb[85].mxu1  ;;  %v3102_v59 = vadd.f32 %v3101_v38, %v3100_v29  ;;  %4251 = vmatprep.mubr.msk.f32.mxu1 %vm4301_vm2, %v4302_v16 }
 0x18a   :  { %v2824_v45 = vadd.f32 %v2823_v33, %v2822_v25  ;;  %v2606_v61 = vmax.f32 %v2183_v58, 0.0  ;;  %v2827_v4 = vsel %vm278_vm0, %v2477_v26, 0.0 }
 0x18b   :  { %v2825_v52 = vsel %vm278_vm0, %v2476_v35, 0.0  ;;  %v3990_v57 = vpop.f32.mrb[86].mxu0  ;;  %v3104_v8 = vadd.f32 %v3103_v51, %v3102_v59  ;;  %v3107_v42 = vsel %vm278_vm0, %v2607_v55, 0.0 }
 0x18c   :  { %v2826_v7 = vadd.f32 %v2825_v52, %v2824_v45  ;;  %v2479_v9 = vmax.f32 %v3990_v57, 0.0  ;;  %v1543_v0 = vpop.f32.mrb[87].mxu0  ;;  %v3105_v39 = vsel %vm278_vm0, %v2606_v61, 0.0  ;;  %v4185_v12 = vpop.f32.mrb[86].mxu1 }
 0x18d   :  { %v2478_v10 = vmax.f32 %v1543_v0, 0.0  ;;  %v2609_v48 = vmax.f32 %v4185_v12, 0.0  ;;  %v2193_v13 = vpop.f32.mrb[87].mxu1  ;;  %v3106_v23 = vadd.f32 %v3105_v39, %v3104_v8 }
 0x18e   :  { %v2828_v11 = vadd.f32 %v2827_v4, %v2826_v7  ;;  %v2608_v25 = vmax.f32 %v2193_v13, 0.0  ;;  %v2831_v35 = vsel %vm278_vm0, %v2479_v9, 0.0 }
 0x18f   :  { %v2829_v21 = vsel %vm278_vm0, %v2478_v10, 0.0  ;;  %v3993_v22 = vpop.f32.mrb[88].mxu0  ;;  %v3108_v38 = vadd.f32 %v3107_v42, %v3106_v23  ;;  %v3111_v55 = vsel %vm278_vm0, %v2609_v48, 0.0 }
 0x190   :  { %v2830_v26 = vadd.f32 %v2829_v21, %v2828_v11  ;;  %v2481_v27 = vmax.f32 %v3993_v22, 0.0  ;;  %v1553_v33 = vpop.f32.mrb[89].mxu0  ;;  %v3109_v37 = vsel %vm278_vm0, %v2608_v25, 0.0  ;;  %v4188_v45 = vpop.f32.mrb[88].mxu1 }
 0x191   :  { %v2480_v29 = vmax.f32 %v1553_v33, 0.0  ;;  %v2611_v58 = vmax.f32 %v4188_v45, 0.0  ;;  %v2203_v52 = vpop.f32.mrb[89].mxu1  ;;  %v3110_v61 = vadd.f32 %v3109_v37, %v3108_v38 }
 0x192   :  { %v2832_v51 = vadd.f32 %v2831_v35, %v2830_v26  ;;  %v2610_v4 = vmax.f32 %v2203_v52, 0.0  ;;  %v2835_v7 = vsel %vm278_vm0, %v2481_v27, 0.0 }
 0x193   :  { %v2833_v57 = vsel %vm278_vm0, %v2480_v29, 0.0  ;;  %v3996_v59 = vpop.f32.mrb[90].mxu0  ;;  %v3112_v39 = vadd.f32 %v3111_v55, %v3110_v61  ;;  %v3115_v48 = vsel %vm278_vm0, %v2611_v58, 0.0 }
 0x194   :  { %v2834_v0 = vadd.f32 %v2833_v57, %v2832_v51  ;;  %v1563_v10 = vpop.f32.mrb[91].mxu0  ;;  %v2483_v9 = vmax.f32 %v3996_v59, 0.0  ;;  %v3113_v12 = vsel %vm278_vm0, %v2610_v4, 0.0  ;;  %v4191_v11 = vpop.f32.mrb[90].mxu1 }
 0x195   :  { %v2482_v8 = vmax.f32 %v1563_v10, 0.0  ;;  %v2613_v13 = vmax.f32 %v4191_v11, 0.0  ;;  %v2213_v16 = vpop.f32.mrb[91].mxu1  ;;  %v3114_v23 = vadd.f32 %v3113_v12, %v3112_v39 }
 0x196   :  { %v2836_v42 = vadd.f32 %v2835_v7, %v2834_v0  ;;  %v2612_v25 = vmax.f32 %v2213_v16, 0.0  ;;  %v2839_v35 = vsel %vm278_vm0, %v2483_v9, 0.0 }
 0x197   :  { %v2837_v21 = vsel %vm278_vm0, %v2482_v8, 0.0  ;;  %v3999_v22 = vpop.f32.mrb[92].mxu0  ;;  %v3116_v38 = vadd.f32 %v3115_v48, %v3114_v23  ;;  %v3119_v55 = vsel %vm278_vm0, %v2613_v13, 0.0 }
 0x198   :  { %v2838_v26 = vadd.f32 %v2837_v21, %v2836_v42  ;;  %v2485_v27 = vmax.f32 %v3999_v22, 0.0  ;;  %v1573_v33 = vpop.f32.mrb[93].mxu0  ;;  %v3117_v37 = vsel %vm278_vm0, %v2612_v25, 0.0  ;;  %v4194_v45 = vpop.f32.mrb[92].mxu1 }
 0x199   :  { %v2484_v29 = vmax.f32 %v1573_v33, 0.0  ;;  %v2615_v58 = vmax.f32 %v4194_v45, 0.0  ;;  %v2223_v52 = vpop.f32.mrb[93].mxu1  ;;  %v3118_v61 = vadd.f32 %v3117_v37, %v3116_v38 }
 0x19a   :  { %v2840_v51 = vadd.f32 %v2839_v35, %v2838_v26  ;;  %v2614_v4 = vmax.f32 %v2223_v52, 0.0  ;;  %v2843_v7 = vsel %vm278_vm0, %v2485_v27, 0.0 }
 0x19b   :  { %v2841_v57 = vsel %vm278_vm0, %v2484_v29, 0.0  ;;  %v4002_v59 = vpop.f32.mrb[94].mxu0  ;;  %v3120_v39 = vadd.f32 %v3119_v55, %v3118_v61  ;;  %v3123_v48 = vsel %vm278_vm0, %v2615_v58, 0.0 }
 0x19c   :  { %v2842_v0 = vadd.f32 %v2841_v57, %v2840_v51  ;;  %v1583_v10 = vpop.f32.mrb[95].mxu0  ;;  %v2487_v9 = vmax.f32 %v4002_v59, 0.0  ;;  %v3121_v12 = vsel %vm278_vm0, %v2614_v4, 0.0  ;;  %v4197_v11 = vpop.f32.mrb[94].mxu1 }
 0x19d   :  { %v2486_v8 = vmax.f32 %v1583_v10, 0.0  ;;  %v2617_v13 = vmax.f32 %v4197_v11, 0.0  ;;  %v2233_v16 = vpop.f32.mrb[95].mxu1  ;;  %v3122_v23 = vadd.f32 %v3121_v12, %v3120_v39 }
 0x19e   :  { %v2844_v42 = vadd.f32 %v2843_v7, %v2842_v0  ;;  %v2616_v25 = vmax.f32 %v2233_v16, 0.0  ;;  %v2847_v29 = vsel %vm278_vm0, %v2487_v9, 0.0 }
 0x19f   :  { %v2845_v21 = vsel %vm278_vm0, %v2486_v8, 0.0  ;;  %v4005_v22 = vpop.f32.mrb[96].mxu0  ;;  %v3132_v35 = vsel %vm278_vm0, %v2617_v13, 0.0  ;;  %v5606_v37 = vadd.f32 %v3123_v48, %v3122_v23 }
 0x1a0   :  { %v2846_v26 = vadd.f32 %v2845_v21, %v2844_v42  ;;  %v2489_v27 = vmax.f32 %v4005_v22, 0.0  ;;  %v1593_v33 = vpop.f32.mrb[97].mxu0  ;;  %v3131_v45 = vsel %vm278_vm0, %v2616_v25, 0.0  ;;  %v4200_v51 = vpop.f32.mrb[96].mxu1 }
 0x1a1   :  { %v2488_v38 = vmax.f32 %v1593_v33, 0.0  ;;  %v3133_v52 = vadd.f32 %v3132_v35, %v3131_v45  ;;  %v2619_v57 = vmax.f32 %v4200_v51, 0.0  ;;  %v2243_v59 = vpop.f32.mrb[97].mxu1 }
 0x1a2   :  { %v2848_v55 = vadd.f32 %v2847_v29, %v2846_v26  ;;  %v2856_v58 = vsel %vm278_vm0, %v2489_v27, 0.0  ;;  %v2618_v7 = vmax.f32 %v2243_v59, 0.0 }
 0x1a3   :  { %v2855_v61 = vsel %vm278_vm0, %v2488_v38, 0.0  ;;  %v4008_v4 = vpop.f32.mrb[98].mxu0  ;;  %v3136_v48 = vsel %vm278_vm0, %v2619_v57, 0.0 }
 0x1a4   :  { %v2849_v0 = vrot.slane %v2848_v55, 4  ;;  %v2857_v10 = vadd.f32 %v2856_v58, %v2855_v61  ;;  %v1603_v8 = vpop.f32.mrb[99].mxu0  ;;  %v2491_v9 = vmax.f32 %v4008_v4, 0.0  ;;  %v3134_v12 = vsel %vm278_vm0, %v2618_v7, 0.0  ;;  %v4203_v11 = vpop.f32.mrb[98].mxu1 }
 0x1a5   :  { %v2490_v39 = vmax.f32 %v1603_v8, 0.0  ;;  %v3135_v13 = vadd.f32 %v3134_v12, %v3133_v52  ;;  %v2621_v16 = vmax.f32 %v4203_v11, 0.0  ;;  %v2253_v21 = vpop.f32.mrb[99].mxu1 }
 0x1a6   :  { %v2850_v42 = vadd.f32 %v2849_v0, %v2848_v55  ;;  %v2620_v25 = vmax.f32 %v2253_v21, 0.0  ;;  %v2860_v29 = vsel %vm278_vm0, %v2491_v9, 0.0 }
 0x1a7   :  { %v2858_v22 = vsel %vm278_vm0, %v2490_v39, 0.0  ;;  %v4011_v23 = vpop.f32.mrb[100].mxu0  ;;  %v3137_v45 = vadd.f32 %v3136_v48, %v3135_v13  ;;  %v3140_v52 = vsel %vm278_vm0, %v2621_v16, 0.0 }
 0x1a8   :  { %v2851_v26 = vrot.slane %v2850_v42, 2  ;;  %v2859_v27 = vadd.f32 %v2858_v22, %v2857_v10  ;;  %v2493_v33 = vmax.f32 %v4011_v23, 0.0  ;;  %v1613_v35 = vpop.f32.mrb[101].mxu0  ;;  %v3138_v51 = vsel %vm278_vm0, %v2620_v25, 0.0  ;;  %v4206_v55 = vpop.f32.mrb[100].mxu1 }
 0x1a9   :  { %v2492_v38 = vmax.f32 %v1613_v35, 0.0  ;;  %v2623_v59 = vmax.f32 %v4206_v55, 0.0  ;;  %v2263_v61 = vpop.f32.mrb[101].mxu1  ;;  %v3139_v0 = vadd.f32 %v3138_v51, %v3137_v45 }
 0x1aa   :  { %v2852_v58 = vadd.f32 %v2851_v26, %v2850_v42  ;;  %v2861_v57 = vadd.f32 %v2860_v29, %v2859_v27  ;;  %v2622_v10 = vmax.f32 %v2263_v61, 0.0  ;;  %v2864_v39 = vsel %vm278_vm0, %v2493_v33, 0.0 }
 0x1ab   :  { %v2862_v4 = vsel %vm278_vm0, %v2492_v38, 0.0  ;;  %v4014_v7 = vpop.f32.mrb[102].mxu0  ;;  %v3141_v13 = vadd.f32 %v3140_v52, %v3139_v0  ;;  %v3144_v23 = vsel %vm278_vm0, %v2623_v59, 0.0 }
 0x1ac   :  { %v2853_v8 = vrot.slane %v2852_v58, 1  ;;  %v2863_v9 = vadd.f32 %v2862_v4, %v2861_v57  ;;  %v1623_v12 = vpop.f32.mrb[103].mxu0  ;;  %v2495_v11 = vmax.f32 %v4014_v7, 0.0  ;;  %v3142_v42 = vsel %vm278_vm0, %v2622_v10, 0.0  ;;  %v4209_v21 = vpop.f32.mrb[102].mxu1 }
 0x1ad   :  { %v2494_v48 = vmax.f32 %v1623_v12, 0.0  ;;  %v2625_v25 = vmax.f32 %v4209_v21, 0.0  ;;  %v2273_v26 = vpop.f32.mrb[103].mxu1  ;;  %v3143_v29 = vadd.f32 %v3142_v42, %v3141_v13 }
 0x1ae   :  { %v2854_v22 = vadd.f32 %v2853_v8, %v2852_v58  ;;  %v2865_v16 = vadd.f32 %v2864_v39, %v2863_v9  ;;  %v2624_v33 = vmax.f32 %v2273_v26, 0.0  ;;  %v2868_v57 = vsel %vm278_vm0, %v2495_v11, 0.0 }
 0x1af   :  { %v2866_v27 = vsel %vm278_vm0, %v2494_v48, 0.0  ;;  %v4017_v35 = vpop.f32.mrb[104].mxu0  ;;  %v3145_v61 = vadd.f32 %v3144_v23, %v3143_v29  ;;  %v3148_v0 = vsel %vm278_vm0, %v2625_v25, 0.0 }
 0x1b0   :  { %v3202_v38 = vmul.f32 0.00390625, %v2854_v22  ;;  %v2867_v45 = vadd.f32 %v2866_v27, %v2865_v16  ;;  %v2497_v51 = vmax.f32 %v4017_v35, 0.0  ;;  %v1633_v55 = vpop.f32.mrb[105].mxu0  ;;  %v3146_v58 = vsel %vm278_vm0, %v2624_v33, 0.0  ;;  %v4212_v4 = vpop.f32.mrb[104].mxu1 }
 0x1b1   :  { %v2496_v52 = vmax.f32 %v1633_v55, 0.0  ;;  %v2627_v10 = vmax.f32 %v4212_v4, 0.0  ;;  %v2283_v8 = vpop.f32.mrb[105].mxu1  ;;  %v3147_v12 = vadd.f32 %v3146_v58, %v3145_v61 }
 0x1b2   :  { %v5625_v59 = vsel %vm3229_vm3, %v3202_v38, %v5556_v40  ;;  %v2869_v7 = vadd.f32 %v2868_v57, %v2867_v45  ;;  %v2626_v48 = vmax.f32 %v2283_v8, 0.0  ;;  %v2872_v11 = vsel %vm278_vm0, %v2497_v51, 0.0 }
 0x1b3   :  { %v2870_v39 = vsel %vm278_vm0, %v2496_v52, 0.0  ;;  %v4020_v9 = vpop.f32.mrb[106].mxu0  ;;  %v3149_v16 = vadd.f32 %v3148_v0, %v3147_v12  ;;  %v3152_v25 = vsel %vm278_vm0, %v2627_v10, 0.0 }
 0x1b4   :  { %v2871_v13 = vadd.f32 %v2870_v39, %v2869_v7  ;;  %v1643_v42 = vpop.f32.mrb[107].mxu0  ;;  %v2499_v21 = vmax.f32 %v4020_v9, 0.0  ;;  %v3150_v40 = vsel %vm278_vm0, %v2626_v48, 0.0  ;;  %v4215_v23 = vpop.f32.mrb[106].mxu1 }
 0x1b5   :  { %v2498_v22 = vmax.f32 %v1643_v42, 0.0  ;;  %v2629_v27 = vmax.f32 %v4215_v23, 0.0  ;;  %v2293_v35 = vpop.f32.mrb[107].mxu1  ;;  %v3151_v38 = vadd.f32 %v3150_v40, %v3149_v16 }
 0x1b6   :  { %v2873_v26 = vadd.f32 %v2872_v11, %v2871_v13  ;;  %v2628_v45 = vmax.f32 %v2293_v35, 0.0  ;;  %v2876_v52 = vsel %vm278_vm0, %v2499_v21, 0.0 }
 0x1b7   :  { %v2874_v29 = vsel %vm278_vm0, %v2498_v22, 0.0  ;;  %v4023_v33 = vpop.f32.mrb[108].mxu0  ;;  %v3153_v58 = vadd.f32 %v3152_v25, %v3151_v38  ;;  %v3156_v10 = vsel %vm278_vm0, %v2629_v27, 0.0 }
 0x1b8   :  { %v2875_v55 = vadd.f32 %v2874_v29, %v2873_v26  ;;  %v2501_v51 = vmax.f32 %v4023_v33, 0.0  ;;  %v1653_v57 = vpop.f32.mrb[109].mxu0  ;;  %v3154_v4 = vsel %vm278_vm0, %v2628_v45, 0.0  ;;  %v4218_v7 = vpop.f32.mrb[108].mxu1 }
 0x1b9   :  { %v2500_v61 = vmax.f32 %v1653_v57, 0.0  ;;  %v2631_v8 = vmax.f32 %v4218_v7, 0.0  ;;  %v2303_v39 = vpop.f32.mrb[109].mxu1  ;;  %v3155_v48 = vadd.f32 %v3154_v4, %v3153_v58 }
 0x1ba   :  { %v2877_v0 = vadd.f32 %v2876_v52, %v2875_v55  ;;  %v2630_v11 = vmax.f32 %v2303_v39, 0.0  ;;  %v2880_v13 = vsel %vm278_vm0, %v2501_v51, 0.0 }
 0x1bb   :  { %v2878_v9 = vsel %vm278_vm0, %v2500_v61, 0.0  ;;  %v4026_v12 = vpop.f32.mrb[110].mxu0  ;;  %v3157_v40 = vadd.f32 %v3156_v10, %v3155_v48  ;;  %v3160_v27 = vsel %vm278_vm0, %v2631_v8, 0.0 }
 0x1bc   :  { %v2879_v42 = vadd.f32 %v2878_v9, %v2877_v0  ;;  %v1663_v22 = vpop.f32.mrb[111].mxu0  ;;  %v2503_v21 = vmax.f32 %v4026_v12, 0.0  ;;  %v3158_v23 = vsel %vm278_vm0, %v2630_v11, 0.0  ;;  %v4221_v26 = vpop.f32.mrb[110].mxu1 }
 0x1bd   :  { %v2502_v16 = vmax.f32 %v1663_v22, 0.0  ;;  %v2633_v35 = vmax.f32 %v4221_v26, 0.0  ;;  %v2313_v29 = vpop.f32.mrb[111].mxu1  ;;  %v3159_v45 = vadd.f32 %v3158_v23, %v3157_v40 }
 0x1be   :  { %v2881_v25 = vadd.f32 %v2880_v13, %v2879_v42  ;;  %v2632_v55 = vmax.f32 %v2313_v29, 0.0  ;;  %v2884_v61 = vsel %vm278_vm0, %v2503_v21, 0.0 }
 0x1bf   :  { %v2882_v33 = vsel %vm278_vm0, %v2502_v16, 0.0  ;;  %v4029_v38 = vpop.f32.mrb[112].mxu0  ;;  %v3161_v4 = vadd.f32 %v3160_v27, %v3159_v45  ;;  %v3164_v8 = vsel %vm278_vm0, %v2633_v35, 0.0 }
 0x1c0   :  { %v2883_v57 = vadd.f32 %v2882_v33, %v2881_v25  ;;  %v2505_v51 = vmax.f32 %v4029_v38, 0.0  ;;  %v1673_v52 = vpop.f32.mrb[113].mxu0  ;;  %v3162_v7 = vsel %vm278_vm0, %v2632_v55, 0.0  ;;  %v4224_v0 = vpop.f32.mrb[112].mxu1 }
 0x1c1   :  { %v2504_v58 = vmax.f32 %v1673_v52, 0.0  ;;  %v2635_v39 = vmax.f32 %v4224_v0, 0.0  ;;  %v2323_v9 = vpop.f32.mrb[113].mxu1  ;;  %v3163_v11 = vadd.f32 %v3162_v7, %v3161_v4 }
 0x1c2   :  { %v2885_v10 = vadd.f32 %v2884_v61, %v2883_v57  ;;  %v2634_v13 = vmax.f32 %v2323_v9, 0.0  ;;  %v2888_v42 = vsel %vm278_vm0, %v2505_v51, 0.0 }
 0x1c3   :  { %v2886_v12 = vsel %vm278_vm0, %v2504_v58, 0.0  ;;  %v4032_v48 = vpop.f32.mrb[114].mxu0  ;;  %v3165_v23 = vadd.f32 %v3164_v8, %v3163_v11  ;;  %v3168_v35 = vsel %vm278_vm0, %v2635_v39, 0.0 }
 0x1c4   :  { %v2887_v22 = vadd.f32 %v2886_v12, %v2885_v10  ;;  %v1683_v16 = vpop.f32.mrb[115].mxu0  ;;  %v2507_v21 = vmax.f32 %v4032_v48, 0.0  ;;  %v3166_v26 = vsel %vm278_vm0, %v2634_v13, 0.0  ;;  %v4227_v25 = vpop.f32.mrb[114].mxu1 }
 0x1c5   :  { %v2506_v40 = vmax.f32 %v1683_v16, 0.0  ;;  %v2637_v29 = vmax.f32 %v4227_v25, 0.0  ;;  %v2333_v33 = vpop.f32.mrb[115].mxu1  ;;  %v3167_v55 = vadd.f32 %v3166_v26, %v3165_v23 }
 0x1c6   :  { %v2889_v27 = vadd.f32 %v2888_v42, %v2887_v22  ;;  %v2636_v57 = vmax.f32 %v2333_v33, 0.0  ;;  %v2892_v58 = vsel %vm278_vm0, %v2507_v21, 0.0 }
 0x1c7   :  { %v2890_v38 = vsel %vm278_vm0, %v2506_v40, 0.0  ;;  %v4035_v45 = vpop.f32.mrb[116].mxu0  ;;  %v3169_v7 = vadd.f32 %v3168_v35, %v3167_v55  ;;  %v3172_v39 = vsel %vm278_vm0, %v2637_v29, 0.0 }
 0x1c8   :  { %v2891_v52 = vadd.f32 %v2890_v38, %v2889_v27  ;;  %v2509_v51 = vmax.f32 %v4035_v45, 0.0  ;;  %v1693_v61 = vpop.f32.mrb[117].mxu0  ;;  %v3170_v0 = vsel %vm278_vm0, %v2636_v57, 0.0  ;;  %v4230_v10 = vpop.f32.mrb[116].mxu1 }
 0x1c9   :  { %v2508_v4 = vmax.f32 %v1693_v61, 0.0  ;;  %v2639_v9 = vmax.f32 %v4230_v10, 0.0  ;;  %v2343_v12 = vpop.f32.mrb[117].mxu1  ;;  %v3171_v13 = vadd.f32 %v3170_v0, %v3169_v7 }
 0x1ca   :  { %v2893_v8 = vadd.f32 %v2892_v58, %v2891_v52  ;;  %v2638_v42 = vmax.f32 %v2343_v12, 0.0  ;;  %v2896_v22 = vsel %vm278_vm0, %v2509_v51, 0.0 }
 0x1cb   :  { %v2894_v48 = vsel %vm278_vm0, %v2508_v4, 0.0  ;;  %v4038_v11 = vpop.f32.mrb[118].mxu0  ;;  %v3173_v26 = vadd.f32 %v3172_v39, %v3171_v13  ;;  %v3176_v29 = vsel %vm278_vm0, %v2639_v9, 0.0 }
 0x1cc   :  { %v2895_v16 = vadd.f32 %v2894_v48, %v2893_v8  ;;  %v1703_v40 = vpop.f32.mrb[119].mxu0  ;;  %v2511_v21 = vmax.f32 %v4038_v11, 0.0  ;;  %v3174_v25 = vsel %vm278_vm0, %v2638_v42, 0.0  ;;  %v4233_v27 = vpop.f32.mrb[118].mxu1 }
 0x1cd   :  { %v2510_v23 = vmax.f32 %v1703_v40, 0.0  ;;  %v2641_v33 = vmax.f32 %v4233_v27, 0.0  ;;  %v2353_v38 = vpop.f32.mrb[119].mxu1  ;;  %v3175_v57 = vadd.f32 %v3174_v25, %v3173_v26 }
 0x1ce   :  { %v2897_v35 = vadd.f32 %v2896_v22, %v2895_v16  ;;  %v2640_v52 = vmax.f32 %v2353_v38, 0.0  ;;  %v2900_v4 = vsel %vm278_vm0, %v2511_v21, 0.0 }
 0x1cf   :  { %v2898_v45 = vsel %vm278_vm0, %v2510_v23, 0.0  ;;  %v4041_v55 = vpop.f32.mrb[120].mxu0  ;;  %v3177_v0 = vadd.f32 %v3176_v29, %v3175_v57  ;;  %v3180_v9 = vsel %vm278_vm0, %v2641_v33, 0.0 }
 0x1d0   :  { %v2899_v61 = vadd.f32 %v2898_v45, %v2897_v35  ;;  %v2513_v51 = vmax.f32 %v4041_v55, 0.0  ;;  %v1713_v58 = vpop.f32.mrb[121].mxu0  ;;  %v3178_v10 = vsel %vm278_vm0, %v2640_v52, 0.0  ;;  %v4236_v8 = vpop.f32.mrb[120].mxu1 }
 0x1d1   :  { %v2512_v7 = vmax.f32 %v1713_v58, 0.0  ;;  %v2643_v12 = vmax.f32 %v4236_v8, 0.0  ;;  %v2363_v48 = vpop.f32.mrb[121].mxu1  ;;  %v3179_v42 = vadd.f32 %v3178_v10, %v3177_v0 }
 0x1d2   :  { %v2901_v39 = vadd.f32 %v2900_v4, %v2899_v61  ;;  %v2642_v22 = vmax.f32 %v2363_v48, 0.0  ;;  %v2904_v16 = vsel %vm278_vm0, %v2513_v51, 0.0 }
 0x1d3   :  { %v2902_v11 = vsel %vm278_vm0, %v2512_v7, 0.0  ;;  %v4044_v13 = vpop.f32.mrb[122].mxu0  ;;  %v3181_v25 = vadd.f32 %v3180_v9, %v3179_v42  ;;  %v3184_v33 = vsel %vm278_vm0, %v2643_v12, 0.0 }
 0x1d4   :  { %v2903_v40 = vadd.f32 %v2902_v11, %v2901_v39  ;;  %v1723_v23 = vpop.f32.mrb[123].mxu0  ;;  %v2515_v21 = vmax.f32 %v4044_v13, 0.0  ;;  %v3182_v27 = vsel %vm278_vm0, %v2642_v22, 0.0  ;;  %v4239_v35 = vpop.f32.mrb[122].mxu1 }
 0x1d5   :  { %v2514_v26 = vmax.f32 %v1723_v23, 0.0  ;;  %v2645_v38 = vmax.f32 %v4239_v35, 0.0  ;;  %v2373_v45 = vpop.f32.mrb[123].mxu1  ;;  %v3183_v52 = vadd.f32 %v3182_v27, %v3181_v25 }
 0x1d6   :  { %v2905_v29 = vadd.f32 %v2904_v16, %v2903_v40  ;;  %v2644_v61 = vmax.f32 %v2373_v45, 0.0  ;;  %v2908_v7 = vsel %vm278_vm0, %v2515_v21, 0.0 }
 0x1d7   :  { %v2906_v55 = vsel %vm278_vm0, %v2514_v26, 0.0  ;;  %v4047_v57 = vpop.f32.mrb[124].mxu0  ;;  %v3185_v10 = vadd.f32 %v3184_v33, %v3183_v52  ;;  %v3188_v12 = vsel %vm278_vm0, %v2645_v38, 0.0 }
 0x1d8   :  { %v2907_v58 = vadd.f32 %v2906_v55, %v2905_v29  ;;  %v2517_v51 = vmax.f32 %v4047_v57, 0.0  ;;  %v1733_v4 = vpop.f32.mrb[125].mxu0  ;;  %v3186_v8 = vsel %vm278_vm0, %v2644_v61, 0.0  ;;  %v4242_v39 = vpop.f32.mrb[124].mxu1 }
 0x1d9   :  { %v2516_v0 = vmax.f32 %v1733_v4, 0.0  ;;  %v2647_v48 = vmax.f32 %v4242_v39, 0.0  ;;  %v2383_v11 = vpop.f32.mrb[125].mxu1  ;;  %v3187_v22 = vadd.f32 %v3186_v8, %v3185_v10  ;;  %v2523_v8 = vmax.f32 %v5220_v41, 0.0 }
 0x1da   :  { %v2909_v9 = vadd.f32 %v2908_v7, %v2907_v58  ;;  %v2646_v16 = vmax.f32 %v2383_v11, 0.0  ;;  %v2912_v40 = vsel %vm278_vm0, %v2517_v51, 0.0  ;;  %v2522_v58 = vmax.f32 %v5227_v44, 0.0 }
 0x1db   :  { %v2910_v13 = vsel %vm278_vm0, %v2516_v0, 0.0  ;;  %v4050_v42 = vpop.f32.mrb[126].mxu0  ;;  %v3189_v27 = vadd.f32 %v3188_v12, %v3187_v22  ;;  %v3192_v33 = vsel %vm278_vm0, %v2647_v48, 0.0  ;;  %v2524_v11 = vmax.f32 %v5248_v56, 0.0 }
 0x1dc   :  { %v2911_v23 = vadd.f32 %v2910_v13, %v2909_v9  ;;  %v1743_v26 = vpop.f32.mrb[127].mxu0  ;;  %v2519_v21 = vmax.f32 %v4050_v42, 0.0  ;;  %v3190_v35 = vsel %vm278_vm0, %v2646_v16, 0.0  ;;  %v2927_v48 = vsel %vm278_vm0, %v2522_v58, 0.0 }
 0x1dd   :  { %v2518_v25 = vmax.f32 %v1743_v26, 0.0  ;;  %v3191_v55 = vadd.f32 %v3190_v35, %v3189_v27  ;;  %v2929_v42 = vsel %vm278_vm0, %v2523_v8, 0.0  ;;  %v2525_v22 = vmax.f32 %v5242_v54, 0.0 }
 0x1de   :  { %v2913_v29 = vadd.f32 %v2912_v40, %v2911_v23  ;;  %v2916_v51 = vsel %vm278_vm0, %v2519_v21, 0.0  ;;  %v2931_v23 = vsel %vm278_vm0, %v2524_v11, 0.0  ;;  %v2526_v41 = vmax.f32 %v5270_v6, 0.0 }
 0x1df   :  { %v2914_v38 = vsel %vm278_vm0, %v2518_v25, 0.0  ;;  %v4053_v45 = vpop.f32.mrb[128].mxu0  ;;  %v5675_v7 = vadd.f32 %v3192_v33, %v3191_v55  ;;  %v2933_v25 = vsel %vm278_vm0, %v2525_v22, 0.0  ;;  %v2527_v27 = vmax.f32 %v5264_v3, 0.0 }
 0x1e0   :  { %v2915_v57 = vadd.f32 %v2914_v38, %v2913_v29  ;;  %v2521_v52 = vmax.f32 %v4053_v45, 0.0  ;;  %v1753_v61 = vpop.f32.mrb[129].mxu0  ;;  %v2935_v29 = vsel %vm278_vm0, %v2526_v41, 0.0  ;;  %v2528_v33 = vmax.f32 %v5292_v20, 0.0 }
 0x1e1   :  { %v2520_v4 = vmax.f32 %v1753_v61, 0.0  ;;  %v2937_v45 = vsel %vm278_vm0, %v2527_v27, 0.0  ;;  %v2529_v55 = vmax.f32 %v5286_v17, 0.0  ;;  %v2530_v61 = vmax.f32 %v5314_v34, 0.0 }
 0x1e2   :  { %v2917_v0 = vadd.f32 %v2916_v51, %v2915_v57  ;;  %v2925_v10 = vsel %vm278_vm0, %v2521_v52, 0.0  ;;  %v2939_v52 = vsel %vm278_vm0, %v2528_v33, 0.0  ;;  %v2531_v20 = vmax.f32 %v5308_v31, 0.0 }
 0x1e3   :  { %v2924_v39 = vsel %vm278_vm0, %v2520_v4, 0.0  ;;  %v2941_v51 = vsel %vm278_vm0, %v2529_v55, 0.0  ;;  %v2532_v17 = vmax.f32 %v5336_v50, 0.0  ;;  %v2535_v31 = vmax.f32 %v5352_v63, 0.0 }
 0x1e4   :  { %v2918_v9 = vrot.slane %v2917_v0, 4  ;;  %v2926_v12 = vadd.f32 %v2925_v10, %v2924_v39  ;;  %v2945_v8 = vsel %vm278_vm0, %v2531_v20, 0.0  ;;  %v2533_v39 = vmax.f32 %v5330_v47, 0.0 }
 0x1e5   :  { %v2947_v34 = vsel %vm278_vm0, %v2532_v17, 0.0  ;;  %v2536_v50 = vmax.f32 %v5380_v19, 0.0  ;;  %v2537_v47 = vmax.f32 %v5374_v15, 0.0  ;;  %v2539_v63 = vmax.f32 %v5396_v32, 0.0 }
 0x1e6   :  { %v2919_v13 = vadd.f32 %v2918_v9, %v2917_v0  ;;  %v2928_v44 = vadd.f32 %v2927_v48, %v2926_v12  ;;  %v2943_v0 = vsel %vm278_vm0, %v2530_v61, 0.0  ;;  %v2949_v48 = vsel %vm278_vm0, %v2533_v39, 0.0 }
 0x1e7   :  { %v2540_v19 = vmax.f32 %v5421_v53, 0.0  ;;  %v2541_v15 = vmax.f32 %v5415_v49, 0.0  ;;  %v2543_v32 = vmax.f32 %v5430_v1, 0.0  ;;  %v2544_v53 = vmax.f32 %v5439_v18, 0.0 }
 0x1e8   :  { %v2920_v16 = vrot.slane %v2919_v13, 2  ;;  %v2930_v40 = vadd.f32 %v2929_v42, %v2928_v44  ;;  %v2953_v42 = vsel %vm278_vm0, %v2535_v31, 0.0  ;;  %v2545_v49 = vmax.f32 %v5437_v14, 0.0 }
 0x1e9   :  { %v2547_v1 = vmax.f32 %v5443_v28, 0.0  ;;  %v2548_v18 = vmax.f32 %v5451_v46, 0.0  ;;  %v2549_v14 = vmax.f32 %v5449_v43, 0.0  ;;  %v3194_v28 = vrot.slane %v5675_v7, 4 }
 0x1ea   :  { %v2921_v26 = vadd.f32 %v2920_v16, %v2919_v13  ;;  %v2932_v21 = vadd.f32 %v2931_v23, %v2930_v40  ;;  %v2955_v16 = vsel %vm278_vm0, %v2536_v50, 0.0  ;;  %v2957_v23 = vsel %vm278_vm0, %v2537_v47, 0.0 }
 0x1eb   :  { %v2977_v20 = vsel %vm278_vm0, %v2547_v1, 0.0  ;;  %v2979_v17 = vsel %vm278_vm0, %v2548_v18, 0.0  ;;  %v2981_v39 = vsel %vm278_vm0, %v2549_v14, 0.0  ;;  %v2551_v46 = vmax.f32 %v5455_v60, 0.0 }
 0x1ec   :  { %v2922_v35 = vrot.slane %v2921_v26, 1  ;;  %v2934_v56 = vadd.f32 %v2933_v25, %v2932_v21  ;;  %v2961_v25 = vsel %vm278_vm0, %v2539_v63, 0.0 }
 0x1ed   :  { %v2985_v31 = vsel %vm278_vm0, %v2551_v46, 0.0 }
 0x1ee   :  { %v2923_v38 = vadd.f32 %v2922_v35, %v2921_v26  ;;  %v2936_v54 = vadd.f32 %v2935_v29, %v2934_v56  ;;  %v2963_v35 = vsel %vm278_vm0, %v2540_v19, 0.0  ;;  %v2965_v29 = vsel %vm278_vm0, %v2541_v15, 0.0 }
 0x1f0   :  { %v3203_v6 = vmul.f32 0.00390625, %v2923_v38  ;;  %v2938_v57 = vadd.f32 %v2937_v45, %v2936_v54  ;;  %v2969_v45 = vsel %vm278_vm0, %v2543_v32, 0.0 }
 0x1f2   :  { %v5695_v3 = vsel %vm3231_vm4, %v3203_v6, %v5625_v59  ;;  %v2940_v58 = vadd.f32 %v2939_v52, %v2938_v57  ;;  %v2534_v59 = vmax.f32 %v5358_v2, 0.0  ;;  %v2538_v2 = vmax.f32 %v5402_v36, 0.0 }
 0x1f3   :  { %v2542_v36 = vmax.f32 %v5432_v5, 0.0  ;;  %v2971_v6 = vsel %vm278_vm0, %v2544_v53, 0.0  ;;  %v2546_v5 = vmax.f32 %v5445_v30, 0.0  ;;  %v2973_v52 = vsel %vm278_vm0, %v2545_v49, 0.0 }
 0x1f4   :  { %v2942_v4 = vadd.f32 %v2941_v51, %v2940_v58  ;;  %v2951_v13 = vsel %vm278_vm0, %v2534_v59, 0.0  ;;  %v2959_v26 = vsel %vm278_vm0, %v2538_v2, 0.0 }
 0x1f5   :  { %v2967_v38 = vsel %vm278_vm0, %v2542_v36, 0.0  ;;  %v2975_v58 = vsel %vm278_vm0, %v2546_v5, 0.0 }
 0x1f6   :  { %v2944_v10 = vadd.f32 %v2943_v0, %v2942_v4  ;;  %v3056_v4 = vrot.slane %v5538_v24, 4  ;;  %v3125_v0 = vrot.slane %v5606_v37, 4 }
 0x1f8   :  { %v2946_v9 = vadd.f32 %v2945_v8, %v2944_v10  ;;  %v2550_v10 = vmax.f32 %v5457_v62, 0.0  ;;  %v3126_v43 = vadd.f32 %v3125_v0, %v5606_v37 }
 0x1fa   :  { %v2948_v12 = vadd.f32 %v2947_v34, %v2946_v9  ;;  %v3057_v9 = vadd.f32 %v3056_v4, %v5538_v24  ;;  %v2983_v59 = vsel %vm278_vm0, %v2550_v10, 0.0 }
 0x1fc   :  { %v2950_v11 = vadd.f32 %v2949_v48, %v2948_v12  ;;  %v3195_v12 = vadd.f32 %v3194_v28, %v5675_v7  ;;  %v3058_v62 = vrot.slane %v3057_v9, 2 }
 0x1fe   :  { %v2952_v44 = vadd.f32 %v2951_v13, %v2950_v11  ;;  %v3127_v11 = vrot.slane %v3126_v43, 2  ;;  %v3196_v50 = vrot.slane %v3195_v12, 2 }
 0x200   :  { %v2954_v22 = vadd.f32 %v2953_v42, %v2952_v44  ;;  %v3059_v42 = vadd.f32 %v3058_v62, %v3057_v9  ;;  %v3128_v47 = vadd.f32 %v3127_v11, %v3126_v43 }
 0x202   :  { %v2956_v40 = vadd.f32 %v2955_v16, %v2954_v22  ;;  %v3197_v22 = vadd.f32 %v3196_v50, %v3195_v12  ;;  %v3060_v16 = vrot.slane %v3059_v42, 1  ;;  %v3129_v37 = vrot.slane %v3128_v47, 1 }
 0x204   :  { %v2958_v41 = vadd.f32 %v2957_v23, %v2956_v40  ;;  %v3198_v40 = vrot.slane %v3197_v22, 1  ;;  %v3061_v63 = vadd.f32 %v3060_v16, %v3059_v42  ;;  %v3130_v7 = vadd.f32 %v3129_v37, %v3128_v47 }
 0x206   :  { %v2960_v21 = vadd.f32 %v2959_v26, %v2958_v41  ;;  %v3199_v26 = vadd.f32 %v3198_v40, %v3197_v22 }
 0x208   :  { %v2962_v27 = vadd.f32 %v2961_v25, %v2960_v21  ;;  %v3205_v21 = vmul.f32 0.00390625, %v3061_v63  ;;  %v3206_v25 = vmul.f32 0.00390625, %v3130_v7 }
 0x20a   :  { %v2964_v56 = vadd.f32 %v2963_v35, %v2962_v27  ;;  %v3207_v27 = vmul.f32 0.00390625, %v3199_v26 }
 0x20c   :  { %v2966_v33 = vadd.f32 %v2965_v29, %v2964_v56  ;;  %v3584_v29 = vld [vmem:[%s5767_s3] ss:$0 sm:$0xff] }
 0x20e   :  { %v2968_v54 = vadd.f32 %v2967_v38, %v2966_v33 }
 0x210   :  { %v2970_v55 = vadd.f32 %v2969_v45, %v2968_v54 }
 0x212   :  { %v2972_v57 = vadd.f32 %v2971_v6, %v2970_v55 }
 0x214   :  { %v2974_v61 = vadd.f32 %v2973_v52, %v2972_v57 }
 0x216   :  { %v2976_v51 = vadd.f32 %v2975_v58, %v2974_v61 }
 0x218   :  { %v2978_v30 = vadd.f32 %v2977_v20, %v2976_v51 }
 0x21a   :  { %v2980_v8 = vadd.f32 %v2979_v17, %v2978_v30 }
 0x21c   :  { %v2982_v34 = vadd.f32 %v2981_v39, %v2980_v8 }
 0x21e   :  { %v2984_v48 = vadd.f32 %v2983_v59, %v2982_v34 }
 0x220   :  { %v2986_v13 = vadd.f32 %v2985_v31, %v2984_v48 }
 0x222   :  { %v2987_v44 = vrot.slane %v2986_v13, 4 }
 0x224   :  { %v2988_v60 = vadd.f32 %v2987_v44, %v2986_v13 }
 0x226   :  { %v2989_v24 = vrot.slane %v2988_v60, 2 }
 0x228   :  { %v2990_v2 = vadd.f32 %v2989_v24, %v2988_v60 }
 0x22a   :  { %v2991_v23 = vrot.slane %v2990_v2, 1 }
 0x22c   :  { %v2992_v41 = vadd.f32 %v2991_v23, %v2990_v2 }
 0x22e   :  { %v3204_v19 = vmul.f32 0.00390625, %v2992_v41 }
 0x230   :  { %v3234_v15 = vsel %vm3233_vm5, %v3204_v19, %v5695_v3 }
 0x231   :  { %v3236_v35 = vsel %vm3235_vm6, %v3205_v21, %v3234_v15 }
 0x232   :  { %v3238_v36 = vsel %vm3237_vm7, %v3206_v25, %v3236_v35 }
 0x233   :  { %v3240_v56 = vsel %vm3239_vm8, %v3207_v27, %v3238_v36 }
 0x234   :  { %4252 = vmatmul.mubr.msk.f32.vlgmr.msra.gmra.mrb[126].mxu1 %vm278_vm0, %v3240_v56 }
 0x307   :  { %v3309_v32 = vpop.f32.mrb[126].mxu1 }
 0x308   :  { %v3310_v33 = vadd.f32 %v3584_v29, %v3309_v32  ;;  %v4253_v38 = vpop.f32.mrb[127].mxu1 }
 0x30a   :  { %3313 = vst [vmem:[#allocation2] sm:$0xff] %v3310_v33 }
 0x30b   :  { %4287 = shalt.err (!%p4284_p4)
}
 0x30c   :  { %s4288_s8 = scalar_lea.hbm %s5768_s4, 128 }
 0x30d   :  { %p4289_p5 = scmp.ne.s32.totalorder %s5768_s4, %s4288_s8  ;;  %p4292_p6 = scmp.lt.u32.totalorder %s4288_s8, %s5768_s4 }
 0x30f   :  { %p4294_p7 = pnand %p4292_p6, %p4289_p5 }
 0x311   :  { %4297 = shalt.err (!%p4294_p7)
}
 0x312   :  { %3323 = dma.vmem_to_hbm [thread:$0]  %s3321_s30, 128, %s5768_s4, [#allocation3]  }
 0x313   :  { %4298 = dma.done.wait [#allocation3], 128  }
 0x314   :  { %4299 = vsyncadd [#allocation3], 4294967168 }
 0x315   :  { %3327 = vsyncpa [#allocation3], 1 }

</bundles_post_ra>
